<compile_context>
chip_gen: v6e
topology: v6e:2x2x1
jax: 0.10.0
libtpu: 0.0.40
codegen_flags: <defaults>
</compile_context>

<pallas_src>
import functools

import jax
import jax.numpy as jnp
from jax import lax
from jax.experimental import pallas as pl
from jax.experimental.pallas import tpu as pltpu


# ----------------------------------------------------------------------------
# Fused Pallas kernel: body (2x conv3x3+ReLU) + head (text attention)
# ----------------------------------------------------------------------------
def _fused_gmodel_kernel(p1_ref, ids_ref, w1_ref, b1_ref, w2_ref, b2_ref,
                         embed_ref, wh_ref, bh_ref, o_ref, *,
                         H, W, C1, C2, T, V, K, scale):
    """Fused forward for one batch element.

    p1_ref   : (1, H*W, 9*Cin) im2col patches of the zero-padded input image
    ids_ref  : (1, T, 1)       int32 text token ids
    w1_ref   : (9*Cin, C1)     conv1 weight (tap-major, channel-minor)
    b1_ref   : (1, C1)
    w2_ref   : (9*C1, C2)      conv2 weight (tap-major, channel-minor)
    b2_ref   : (1, C2)
    embed_ref: (V, C2)         text embedding table
    wh_ref   : (C2, K)         head output projection
    bh_ref   : (1, K)
    o_ref    : (1, T, K)       logits
    """
    f32 = jnp.float32

    # ---- conv1: one 9*Cin-deep im2col contraction + bias + ReLU ------------
    h1 = jnp.dot(p1_ref[0], w1_ref[...], preferred_element_type=f32)
    h1 = jnp.maximum(h1 + b1_ref[...], 0.0)                        # (H*W, C1)

    # ---- zero-pad h1 spatially, VMEM-resident (built by concatenation) -----
    h1_img = h1.reshape(H, W, C1)
    zrow = jnp.zeros((1, W, C1), f32)
    zcol = jnp.zeros((H + 2, 1, C1), f32)
    h1p = jnp.concatenate([zrow, h1_img, zrow], axis=0)            # (H+2, W, C1)
    h1p = jnp.concatenate([zcol, h1p, zcol], axis=1)               # (H+2, W+2, C1)

    # ---- conv2: 9 shifted views -> single (H*W, 9*C1) x (9*C1, C2) matmul --
    taps = [h1p[kh:kh + H, kw:kw + W, :].reshape(H * W, C1)
            for kh in range(3) for kw in range(3)]
    patches2 = jnp.concatenate(taps, axis=-1)                      # (H*W, 9*C1)
    h2 = jnp.dot(patches2, w2_ref[...], preferred_element_type=f32)
    h2 = jnp.maximum(h2 + b2_ref[...], 0.0)                        # (H*W, C2) visual tokens

    # ---- head: in-kernel embedding lookup via one-hot matmul ---------------
    ids = ids_ref[0]                                               # (T, 1) int32
    onehot = (ids == lax.broadcasted_iota(jnp.int32, (T, V), 1)).astype(f32)
    q = jnp.dot(onehot, embed_ref[...], preferred_element_type=f32)   # (T, C2)

    # scaled dot-product attention over visual tokens (no explicit v.T)
    scores = lax.dot_general(q, h2,
                             dimension_numbers=(((1,), (1,)), ((), ())),
                             preferred_element_type=f32) * scale      # (T, H*W)
    m = jnp.max(scores, axis=-1, keepdims=True)
    p = jnp.exp(scores - m)
    denom = jnp.sum(p, axis=-1, keepdims=True)
    attn = p * pl.reciprocal(denom, approx=True)                      # (T, H*W)

    ctx = jnp.dot(attn, h2, preferred_element_type=f32)               # (T, C2)
    out = jnp.dot(ctx + q, wh_ref[...], preferred_element_type=f32) + bh_ref[...]
    o_ref[0] = out.astype(o_ref.dtype)


# ----------------------------------------------------------------------------
# Wrapper: layout prep (NCHW->NHWC, pad, im2col) + single pallas_call
# ----------------------------------------------------------------------------
@jax.jit
def gmodel_forward(params, image_nchw, text_ids):
    """NCHW image + (N, T) int token ids -> (N, T, K) logits."""
    x = jnp.transpose(image_nchw, (0, 2, 3, 1)).astype(jnp.float32)   # NHWC
    N, H, W, Cin = x.shape
    C1 = params["conv1_w"].shape[-1]
    C2 = params["conv2_w"].shape[-1]
    V, C = params["embed"].shape
    K = params["head_w"].shape[-1]
    T = text_ids.shape[-1]

    # im2col for conv1 (layout only): (N, H*W, 9*Cin), tap-major/channel-minor
    # to match conv1_w.reshape(9*Cin, C1).
    xp = jnp.pad(x, ((0, 0), (1, 1), (1, 1), (0, 0)))
    patches1 = jnp.concatenate(
        [xp[:, kh:kh + H, kw:kw + W, :] for kh in range(3) for kw in range(3)],
        axis=-1).reshape(N, H * W, 9 * Cin)

    w1 = params["conv1_w"].reshape(9 * Cin, C1)
    w2 = params["conv2_w"].reshape(9 * C1, C2)
    b1 = params["conv1_b"].reshape(1, C1)
    b2 = params["conv2_b"].reshape(1, C2)
    bh = params["head_b"].reshape(1, K)
    ids = text_ids.astype(jnp.int32).reshape(N, T, 1)

    kernel = functools.partial(
        _fused_gmodel_kernel, H=H, W=W, C1=C1, C2=C2, T=T, V=V, K=K,
        scale=1.0 / float(C) ** 0.5)

    return pl.pallas_call(
        kernel,
        out_shape=jax.ShapeDtypeStruct((N, T, K), jnp.float32),
        grid_spec=pltpu.PrefetchScalarGridSpec(
            num_scalar_prefetch=0,
            grid=(N,),
            in_specs=[
                pl.BlockSpec((1, H * W, 9 * Cin), lambda n: (n, 0, 0)),
                pl.BlockSpec((1, T, 1), lambda n: (n, 0, 0)),
                pl.BlockSpec((9 * Cin, C1), lambda n: (0, 0)),
                pl.BlockSpec((1, C1), lambda n: (0, 0)),
                pl.BlockSpec((9 * C1, C2), lambda n: (0, 0)),
                pl.BlockSpec((1, C2), lambda n: (0, 0)),
                pl.BlockSpec((V, C), lambda n: (0, 0)),
                pl.BlockSpec((C, K), lambda n: (0, 0)),
                pl.BlockSpec((1, K), lambda n: (0, 0)),
            ],
            out_specs=pl.BlockSpec((1, T, K), lambda n: (n, 0, 0)),
        ),
        compiler_params=pltpu.CompilerParams(
            dimension_semantics=("parallel",)),
    )(patches1, ids, w1, b1, w2, b2, params["embed"], params["head_w"], bh)


# ----------------------------------------------------------------------------
# GModel container (mirrors the PyTorch forward semantics); body+head fused.
# ----------------------------------------------------------------------------
class GModel:
    def __init__(self, params, need_text=True):
        self.params = params
        self.need_text = need_text

    def forward(self, inputs):
        if not isinstance(inputs, (tuple, list)):
            inputs = [inputs]
        image = inputs[0]
        if self.need_text:
            text_ids = inputs[1]
        else:
            # TODO(synk): text-free head variant not exercised in this config.
            text_ids = jnp.zeros((image.shape[0], 1), jnp.int32)
        # body (convs) + head (attention) are fused into one pallas_call.
        return gmodel_forward(self.params, image, text_ids)

    __call__ = forward


def init_params(key, c_in=4, c_mid=32, c_feat=32, vocab=16, num_classes=16):
    ks = jax.random.split(key, 6)
    return {
        "conv1_w": 0.1 * jax.random.normal(ks[0], (3, 3, c_in, c_mid), jnp.float32),
        "conv1_b": 0.1 * jax.random.normal(ks[1], (c_mid,), jnp.float32),
        "conv2_w": 0.1 * jax.random.normal(ks[2], (3, 3, c_mid, c_feat), jnp.float32),
        "conv2_b": 0.1 * jax.random.normal(ks[3], (c_feat,), jnp.float32),
        "embed": 0.1 * jax.random.normal(ks[4], (vocab, c_feat), jnp.float32),
        "head_w": 0.1 * jax.random.normal(ks[5], (c_feat, num_classes), jnp.float32),
        "head_b": jnp.zeros((num_classes,), jnp.float32),
    }


def _reference_forward(params, image_nchw, text_ids):
    """Pure-JAX reference of the same forward pass (for correctness check)."""
    x = jnp.transpose(image_nchw, (0, 2, 3, 1)).astype(jnp.float32)

    def conv(x, w, b):
        y = lax.conv_general_dilated(x, w, (1, 1), "SAME",
                                     dimension_numbers=("NHWC", "HWIO", "NHWC"))
        return jnp.maximum(y + b, 0.0)

    h = conv(conv(x, params["conv1_w"], params["conv1_b"]),
             params["conv2_w"], params["conv2_b"])
    N, H, W, C = h.shape
    v = h.reshape(N, H * W, C)
    q = jnp.take(params["embed"], text_ids, axis=0)
    scores = jnp.einsum("ntc,nsc->nts", q, v) / jnp.sqrt(jnp.float32(C))
    attn = jax.nn.softmax(scores, axis=-1)
    ctx = jnp.einsum("nts,nsc->ntc", attn, v)
    return jnp.einsum("ntc,ck->ntk", ctx + q, params["head_w"]) + params["head_b"]


if __name__ == "__main__":
    key = jax.random.PRNGKey(0)
    k_img, k_txt, k_par = jax.random.split(key, 3)

    N, C, H, W = 2, 4, 16, 16       # image: NCHW, as PyTorch would pass it
    T, VOCAB = 8, 16                # text sequence

    image = jax.random.normal(k_img, (N, C, H, W), jnp.float32)
    text = jax.random.randint(k_txt, (N, T), 0, VOCAB, jnp.int32)

    model = GModel(init_params(k_par, c_in=C, vocab=VOCAB), need_text=True)
    out = model([image, text])
    out = jax.block_until_ready(out)

    assert out.shape == (N, T, 16) and out.dtype == jnp.float32
    assert bool(jnp.all(jnp.isfinite(out)))

    ref = _reference_forward(model.params, image, text)
    max_err = float(jnp.max(jnp.abs(out - ref)))
    assert max_err < 5e-3, f"mismatch vs reference: {max_err}"

    print("KERNEL_OK")
</pallas_src>

<mosaic_0001>
module attributes {stable_mosaic.version = 11 : i64} {
  func.func @_fused_gmodel_kernel(%arg0: i32, %arg1: memref<1x256x36xf32, #tpu.memory_space<vmem>>, %arg2: memref<1x8x1xi32, #tpu.memory_space<vmem>>, %arg3: memref<36x32xf32, #tpu.memory_space<vmem>>, %arg4: memref<1x32xf32, #tpu.memory_space<vmem>>, %arg5: memref<288x32xf32, #tpu.memory_space<vmem>>, %arg6: memref<1x32xf32, #tpu.memory_space<vmem>>, %arg7: memref<16x32xf32, #tpu.memory_space<vmem>>, %arg8: memref<32x16xf32, #tpu.memory_space<vmem>>, %arg9: memref<1x16xf32, #tpu.memory_space<vmem>>, %arg10: memref<1x8x16xf32, #tpu.memory_space<vmem>>) attributes {dimension_semantics = [#tpu.dimension_semantics<parallel>], iteration_bounds = array<i64: 2>, scalar_prefetch = 0 : i64, scratch_operands = 0 : i64, tpu.core_type = #tpu.core_type<tc>, window_params = [{transform_indices = @transform_0, window_bounds = array<i64: 1, 256, 36>}, {transform_indices = @transform_1, window_bounds = array<i64: 1, 8, 1>}, {pipeline_mode = #tpu.pipeline_mode<synchronous>, transform_indices = @transform_2, window_bounds = array<i64: 36, 32>}, {pipeline_mode = #tpu.pipeline_mode<synchronous>, transform_indices = @transform_3, window_bounds = array<i64: 1, 32>}, {pipeline_mode = #tpu.pipeline_mode<synchronous>, transform_indices = @transform_4, window_bounds = array<i64: 288, 32>}, {pipeline_mode = #tpu.pipeline_mode<synchronous>, transform_indices = @transform_5, window_bounds = array<i64: 1, 32>}, {pipeline_mode = #tpu.pipeline_mode<synchronous>, transform_indices = @transform_6, window_bounds = array<i64: 16, 32>}, {pipeline_mode = #tpu.pipeline_mode<synchronous>, transform_indices = @transform_7, window_bounds = array<i64: 32, 16>}, {pipeline_mode = #tpu.pipeline_mode<synchronous>, transform_indices = @transform_8, window_bounds = array<i64: 1, 16>}, {transform_indices = @transform_9, window_bounds = array<i64: 1, 8, 16>}]} {
    %c0 = arith.constant 0 : index
    %c0_0 = arith.constant 0 : index
    %c0_1 = arith.constant 0 : index
    %0 = vector.load %arg1[%c0, %c0_0, %c0_1] : memref<1x256x36xf32, #tpu.memory_space<vmem>>, vector<1x256x36xf32>
    %1 = vector.shape_cast %0 : vector<1x256x36xf32> to vector<256x36xf32>
    %c0_2 = arith.constant 0 : index
    %c0_3 = arith.constant 0 : index
    %2 = vector.load %arg3[%c0_2, %c0_3] : memref<36x32xf32, #tpu.memory_space<vmem>>, vector<36x32xf32>
    %cst = arith.constant dense<0.000000e+00> : vector<256x32xf32>
    %3 = tpu.matmul %1, %2, %cst {dimension_numbers = #tpu.dot_dimension_numbers<[1], [0], [0], [1], [0, 0, 1, 1], [], []>} : vector<256x36xf32>, vector<36x32xf32>, vector<256x32xf32> -> vector<256x32xf32>
    %c0_4 = arith.constant 0 : index
    %c0_5 = arith.constant 0 : index
    %4 = vector.load %arg4[%c0_4, %c0_5] : memref<1x32xf32, #tpu.memory_space<vmem>>, vector<1x32xf32>
    %5 = vector.broadcast %4 : vector<1x32xf32> to vector<256x32xf32>
    %6 = arith.addf %3, %5 : vector<256x32xf32>
    %cst_6 = arith.constant 0.000000e+00 : f32
    %7 = vector.broadcast %cst_6 : f32 to vector<256x32xf32>
    %8 = arith.maximumf %6, %7 : vector<256x32xf32>
    %9 = vector.shape_cast %8 : vector<256x32xf32> to vector<16x16x32xf32>
    %cst_7 = arith.constant 0.000000e+00 : f32
    %10 = vector.broadcast %cst_7 : f32 to vector<1x16x32xf32>
    %cst_8 = arith.constant 0.000000e+00 : f32
    %11 = vector.broadcast %cst_8 : f32 to vector<18x1x32xf32>
    %12 = tpu.concatenate %10, %9, %10 in 0 : vector<1x16x32xf32>, vector<16x16x32xf32>, vector<1x16x32xf32> -> vector<18x16x32xf32>
    %13 = tpu.concatenate %11, %12, %11 in 1 : vector<18x1x32xf32>, vector<18x16x32xf32>, vector<18x1x32xf32> -> vector<18x18x32xf32>
    %14 = vector.extract_strided_slice %13 {offsets = [0, 0, 0], sizes = [16, 16, 32], strides = [1, 1, 1]} : vector<18x18x32xf32> to vector<16x16x32xf32>
    %15 = vector.shape_cast %14 : vector<16x16x32xf32> to vector<256x32xf32>
    %16 = vector.extract_strided_slice %13 {offsets = [0, 1, 0], sizes = [16, 16, 32], strides = [1, 1, 1]} : vector<18x18x32xf32> to vector<16x16x32xf32>
    %17 = vector.shape_cast %16 : vector<16x16x32xf32> to vector<256x32xf32>
    %18 = vector.extract_strided_slice %13 {offsets = [0, 2, 0], sizes = [16, 16, 32], strides = [1, 1, 1]} : vector<18x18x32xf32> to vector<16x16x32xf32>
    %19 = vector.shape_cast %18 : vector<16x16x32xf32> to vector<256x32xf32>
    %20 = vector.extract_strided_slice %13 {offsets = [1, 0, 0], sizes = [16, 16, 32], strides = [1, 1, 1]} : vector<18x18x32xf32> to vector<16x16x32xf32>
    %21 = vector.shape_cast %20 : vector<16x16x32xf32> to vector<256x32xf32>
    %22 = vector.extract_strided_slice %13 {offsets = [1, 1, 0], sizes = [16, 16, 32], strides = [1, 1, 1]} : vector<18x18x32xf32> to vector<16x16x32xf32>
    %23 = vector.shape_cast %22 : vector<16x16x32xf32> to vector<256x32xf32>
    %24 = vector.extract_strided_slice %13 {offsets = [1, 2, 0], sizes = [16, 16, 32], strides = [1, 1, 1]} : vector<18x18x32xf32> to vector<16x16x32xf32>
    %25 = vector.shape_cast %24 : vector<16x16x32xf32> to vector<256x32xf32>
    %26 = vector.extract_strided_slice %13 {offsets = [2, 0, 0], sizes = [16, 16, 32], strides = [1, 1, 1]} : vector<18x18x32xf32> to vector<16x16x32xf32>
    %27 = vector.shape_cast %26 : vector<16x16x32xf32> to vector<256x32xf32>
    %28 = vector.extract_strided_slice %13 {offsets = [2, 1, 0], sizes = [16, 16, 32], strides = [1, 1, 1]} : vector<18x18x32xf32> to vector<16x16x32xf32>
    %29 = vector.shape_cast %28 : vector<16x16x32xf32> to vector<256x32xf32>
    %30 = vector.extract_strided_slice %13 {offsets = [2, 2, 0], sizes = [16, 16, 32], strides = [1, 1, 1]} : vector<18x18x32xf32> to vector<16x16x32xf32>
    %31 = vector.shape_cast %30 : vector<16x16x32xf32> to vector<256x32xf32>
    %32 = tpu.concatenate %15, %17, %19, %21, %23, %25, %27, %29, %31 in 1 : vector<256x32xf32>, vector<256x32xf32>, vector<256x32xf32>, vector<256x32xf32>, vector<256x32xf32>, vector<256x32xf32>, vector<256x32xf32>, vector<256x32xf32>, vector<256x32xf32> -> vector<256x288xf32>
    %c0_9 = arith.constant 0 : index
    %c0_10 = arith.constant 0 : index
    %33 = vector.load %arg5[%c0_9, %c0_10] : memref<288x32xf32, #tpu.memory_space<vmem>>, vector<288x32xf32>
    %cst_11 = arith.constant dense<0.000000e+00> : vector<256x32xf32>
    %34 = tpu.matmul %32, %33, %cst_11 {dimension_numbers = #tpu.dot_dimension_numbers<[1], [0], [0], [1], [0, 0, 1, 1], [], []>} : vector<256x288xf32>, vector<288x32xf32>, vector<256x32xf32> -> vector<256x32xf32>
    %c0_12 = arith.constant 0 : index
    %c0_13 = arith.constant 0 : index
    %35 = vector.load %arg6[%c0_12, %c0_13] : memref<1x32xf32, #tpu.memory_space<vmem>>, vector<1x32xf32>
    %36 = vector.broadcast %35 : vector<1x32xf32> to vector<256x32xf32>
    %37 = arith.addf %34, %36 : vector<256x32xf32>
    %cst_14 = arith.constant 0.000000e+00 : f32
    %38 = vector.broadcast %cst_14 : f32 to vector<256x32xf32>
    %39 = arith.maximumf %37, %38 : vector<256x32xf32>
    %c0_15 = arith.constant 0 : index
    %c0_16 = arith.constant 0 : index
    %c0_17 = arith.constant 0 : index
    %40 = vector.load %arg2[%c0_15, %c0_16, %c0_17] : memref<1x8x1xi32, #tpu.memory_space<vmem>>, vector<1x8x1xi32>
    %41 = vector.shape_cast %40 : vector<1x8x1xi32> to vector<8x1xi32>
    %42 = tpu.iota {dimensions = array<i32: 1>} : vector<8x16xi32>
    %43 = vector.broadcast %41 : vector<8x1xi32> to vector<8x16xi32>
    %44 = arith.cmpi eq, %43, %42 : vector<8x16xi32>
    %45 = arith.extui %44 : vector<8x16xi1> to vector<8x16xi32>
    %46 = arith.sitofp %45 : vector<8x16xi32> to vector<8x16xf32>
    %c0_18 = arith.constant 0 : index
    %c0_19 = arith.constant 0 : index
    %47 = vector.load %arg7[%c0_18, %c0_19] : memref<16x32xf32, #tpu.memory_space<vmem>>, vector<16x32xf32>
    %cst_20 = arith.constant dense<0.000000e+00> : vector<8x32xf32>
    %48 = tpu.matmul %46, %47, %cst_20 {dimension_numbers = #tpu.dot_dimension_numbers<[1], [0], [0], [1], [0, 0, 1, 1], [], []>} : vector<8x16xf32>, vector<16x32xf32>, vector<8x32xf32> -> vector<8x32xf32>
    %cst_21 = arith.constant dense<0.000000e+00> : vector<8x256xf32>
    %49 = tpu.matmul %48, %39, %cst_21 {dimension_numbers = #tpu.dot_dimension_numbers<[1], [1], [0], [0], [0, 0, 1, 0], [], []>} : vector<8x32xf32>, vector<256x32xf32>, vector<8x256xf32> -> vector<8x256xf32>
    %cst_22 = arith.constant 0.176776692 : f32
    %50 = vector.broadcast %cst_22 : f32 to vector<8x256xf32>
    %51 = arith.mulf %49, %50 : vector<8x256xf32>
    %cst_23 = arith.constant dense<0xFF800000> : vector<8xf32>
    %52 = vector.multi_reduction <maximumf>, %51, %cst_23 [1] : vector<8x256xf32> to vector<8xf32>
    %53 = vector.shape_cast %52 : vector<8xf32> to vector<8x1xf32>
    %54 = vector.broadcast %53 : vector<8x1xf32> to vector<8x256xf32>
    %55 = arith.subf %51, %54 : vector<8x256xf32>
    %56 = math.exp %55 : vector<8x256xf32>
    %cst_24 = arith.constant dense<0.000000e+00> : vector<8xf32>
    %57 = vector.multi_reduction <add>, %56, %cst_24 [1] : vector<8x256xf32> to vector<8xf32>
    %58 = vector.shape_cast %57 : vector<8xf32> to vector<8x1xf32>
    %59 = tpu.reciprocal %58 {approx = true} : vector<8x1xf32> -> vector<8x1xf32>
    %60 = vector.broadcast %59 : vector<8x1xf32> to vector<8x256xf32>
    %61 = arith.mulf %56, %60 : vector<8x256xf32>
    %cst_25 = arith.constant dense<0.000000e+00> : vector<8x32xf32>
    %62 = tpu.matmul %61, %39, %cst_25 {dimension_numbers = #tpu.dot_dimension_numbers<[1], [0], [0], [1], [0, 0, 1, 1], [], []>} : vector<8x256xf32>, vector<256x32xf32>, vector<8x32xf32> -> vector<8x32xf32>
    %63 = arith.addf %62, %48 : vector<8x32xf32>
    %c0_26 = arith.constant 0 : index
    %c0_27 = arith.constant 0 : index
    %64 = vector.load %arg8[%c0_26, %c0_27] : memref<32x16xf32, #tpu.memory_space<vmem>>, vector<32x16xf32>
    %cst_28 = arith.constant dense<0.000000e+00> : vector<8x16xf32>
    %65 = tpu.matmul %63, %64, %cst_28 {dimension_numbers = #tpu.dot_dimension_numbers<[1], [0], [0], [1], [0, 0, 1, 1], [], []>} : vector<8x32xf32>, vector<32x16xf32>, vector<8x16xf32> -> vector<8x16xf32>
    %c0_29 = arith.constant 0 : index
    %c0_30 = arith.constant 0 : index
    %66 = vector.load %arg9[%c0_29, %c0_30] : memref<1x16xf32, #tpu.memory_space<vmem>>, vector<1x16xf32>
    %67 = vector.broadcast %66 : vector<1x16xf32> to vector<8x16xf32>
    %68 = arith.addf %65, %67 : vector<8x16xf32>
    %c0_31 = arith.constant 0 : index
    %c0_32 = arith.constant 0 : index
    %c0_33 = arith.constant 0 : index
    %69 = vector.load %arg10[%c0_31, %c0_32, %c0_33] : memref<1x8x16xf32, #tpu.memory_space<vmem>>, vector<1x8x16xf32>
    %70 = vector.shape_cast %69 : vector<1x8x16xf32> to vector<8x16xf32>
    %71 = vector.shape_cast %68 : vector<8x16xf32> to vector<1x8x16xf32>
    tpu.vector_store %arg10[%c0_31, %c0_32, %c0_33], %71 {strides = array<i32>} : memref<1x8x16xf32, #tpu.memory_space<vmem>>, vector<1x8x16xf32>,
    return
  }
  func.func @transform_0(%arg0: i32) -> (i32, i32, i32) {
    %c0_i32 = arith.constant 0 : i32
    %c0_i32_0 = arith.constant 0 : i32
    %c0_i32_1 = arith.constant 0 : i32
    return %arg0, %c0_i32, %c0_i32_0 : i32, i32, i32
  }
  func.func @transform_1(%arg0: i32) -> (i32, i32, i32) {
    %c0_i32 = arith.constant 0 : i32
    %c0_i32_0 = arith.constant 0 : i32
    %c0_i32_1 = arith.constant 0 : i32
    return %arg0, %c0_i32, %c0_i32_0 : i32, i32, i32
  }
  func.func @transform_2(%arg0: i32) -> (i32, i32) {
    %c0_i32 = arith.constant 0 : i32
    %c0_i32_0 = arith.constant 0 : i32
    %c0_i32_1 = arith.constant 0 : i32
    return %c0_i32, %c0_i32_0 : i32, i32
  }
  func.func @transform_3(%arg0: i32) -> (i32, i32) {
    %c0_i32 = arith.constant 0 : i32
    %c0_i32_0 = arith.constant 0 : i32
    %c0_i32_1 = arith.constant 0 : i32
    return %c0_i32, %c0_i32_0 : i32, i32
  }
  func.func @transform_4(%arg0: i32) -> (i32, i32) {
    %c0_i32 = arith.constant 0 : i32
    %c0_i32_0 = arith.constant 0 : i32
    %c0_i32_1 = arith.constant 0 : i32
    return %c0_i32, %c0_i32_0 : i32, i32
  }
  func.func @transform_5(%arg0: i32) -> (i32, i32) {
    %c0_i32 = arith.constant 0 : i32
    %c0_i32_0 = arith.constant 0 : i32
    %c0_i32_1 = arith.constant 0 : i32
    return %c0_i32, %c0_i32_0 : i32, i32
  }
  func.func @transform_6(%arg0: i32) -> (i32, i32) {
    %c0_i32 = arith.constant 0 : i32
    %c0_i32_0 = arith.constant 0 : i32
    %c0_i32_1 = arith.constant 0 : i32
    return %c0_i32, %c0_i32_0 : i32, i32
  }
  func.func @transform_7(%arg0: i32) -> (i32, i32) {
    %c0_i32 = arith.constant 0 : i32
    %c0_i32_0 = arith.constant 0 : i32
    %c0_i32_1 = arith.constant 0 : i32
    return %c0_i32, %c0_i32_0 : i32, i32
  }
  func.func @transform_8(%arg0: i32) -> (i32, i32) {
    %c0_i32 = arith.constant 0 : i32
    %c0_i32_0 = arith.constant 0 : i32
    %c0_i32_1 = arith.constant 0 : i32
    return %c0_i32, %c0_i32_0 : i32, i32
  }
  func.func @transform_9(%arg0: i32) -> (i32, i32, i32) {
    %c0_i32 = arith.constant 0 : i32
    %c0_i32_0 = arith.constant 0 : i32
    %c0_i32_1 = arith.constant 0 : i32
    return %arg0, %c0_i32, %c0_i32_0 : i32, i32, i32
  }
}

</mosaic_0001>

<bundles_post_ra>
// kernel: gmodel_forward.1
= control target key start
LH: loop header
LB: loop body
LE: loop exit
PB: predicated region body
PF: predicated region fallthrough
CT: control target
= control target key end

     0   :  { %14 = vsyncpa [#allocation3], 0  ;;  %s5786_s0 = inlined_call_operand.vmem [shape: f32[2,256,36], index: 0, kind: input, shape index: {}]   ;;  %s5787_s1 = inlined_call_operand.vmem [shape: s32[2,8,1], index: 1, kind: input, shape index: {}]   ;;  %s5788_s2 = inlined_call_operand.vmem [shape: f32[36,32], index: 2, kind: input, shape index: {}]   ;;  %s5789_s3 = inlined_call_operand.vmem [shape: f32[1,32], index: 3, kind: input, shape index: {}]   ;;  %s5790_s4 = inlined_call_operand.vmem [shape: f32[288,32], index: 4, kind: input, shape index: {}]   ;;  %s5791_s5 = inlined_call_operand.vmem [shape: f32[1,32], index: 5, kind: input, shape index: {}]   ;;  %s5792_s6 = inlined_call_operand.vmem [shape: f32[16,32], index: 6, kind: input, shape index: {}]   ;;  %s5793_s7 = inlined_call_operand.vmem [shape: f32[32,16], index: 7, kind: input, shape index: {}]   ;;  %s5794_s8 = inlined_call_operand.vmem [shape: f32[1,16], index: 8, kind: input, shape index: {}]   ;;  %s5795_s9 = inlined_call_operand.hbm [shape: f32[2,8,16], index: 9, kind: output, shape index: {}]  }
   0x1   :  { %16 = vsyncpa [#allocation3 + $0x1], 0  ;;  %s4077_s30 = smov 0   ;;  %s4079_s10 = smov 0  }
   0x2   :  { %s4081_s11 = smov 0   ;;  %s4083_s12 = smov 0  }
   0x3 LB: > { %s4098_s13 = sadd.s32 4294967295, %s4018_s12   ;;  %s3027_s14 = sadd.s32 4294967294, %s4018_s12   ;;  %s4018_s12 = sphi %s4083_s12, %s5941_s12   ;;  %s4014_s11 = sphi %s4081_s11, %s5940_s11   ;;  %s4010_s10 = sphi %s4079_s10, %s5939_s10   ;;  %s4006_s30 = sphi %s4077_s30, %s5938_s30  }
   0x4   : > { %s4102_s15 = sadd.s32 1, %s4018_s12   ;;  %s228_s16 = sadd.s32 1, %s4014_s11 }
   0x5   : > { %s225_s17 = ssub.s32 %s4018_s12, %s4102_s15  ;;  %p238_p0 = scmp.ne.s32.totalorder %s4014_s11, %s4010_s10 }
   0x6   : > { %p226_p1 = scmp.eq.s32.totalorder %s225_s17, 0  ;;  %p239_p2 = scmp.eq.s32.totalorder %s4098_s13, 1 }
   0x7   : > { %p244_p3 = scmp.ne.s32.totalorder %s4010_s10, %s4006_s30  ;;  %p245_p4 = scmp.eq.s32.totalorder %s3027_s14, 1 }
   0x8   : > { %s4113_s18 = scalar_select %p226_p1, %s4014_s11, %s228_s16  }
   0x9   : > { %p4115_p5 = por %p239_p2, %p238_p0  ;;  %p4119_p6 = por %p245_p4, %p244_p3 }
   0xa   : > { %p3030_p7 = scmp.ge.s32.totalorder %s4018_s12, 1  ;;  %p299_p8 = scmp.lt.s32.totalorder %s4018_s12, 3 }
   0xc   : > { %p300_p9 = pnand %p3030_p7, %p299_p8 }
   0xe   : > { %303 = sbr.rel (%p300_p9) target bundleno = 1729 (0x6c1), region = 56 }
  0x13   : > { %v384_v0 = vld [vmem:[%s5788_s2 + $0x20] sm:$0xf]  ;;  %vm489_vm0 = vcmask 1043456   ;;  %v383_v1 = vld [vmem:[%s5788_s2 + $0x18] sm:$0xff]  ;;  %p339_p10 = scmp.lt.s32.totalorder %s4098_s13, 1  ;;  %v382_v2 = vld [vmem:[%s5788_s2 + $0x10] sm:$0xff] }
  0x14   : > { %3294 = vmatprep.subr.msk.mxu0 %vm489_vm0, %v384_v0  ;;  %v381_v3 = vld [vmem:[%s5788_s2 + $0x8] sm:$0xff]  ;;  %vm392_vm1 = vcmask 293888   ;;  %v380_v4 = vld [vmem:[%s5788_s2] sm:$0xff]  ;;  %v5796_v37 = vmov 0.0   ;;  %v1961_v38 = vld [vmem:[%s5790_s4 + $0x118] sm:$0xff]  ;;  %vm783_vm2 = vcmask 1040384  }
  0x15   : > { %3295 = vmatpush3.msk.msra.mxu0 %vm489_vm0, %v384_v0  ;;  %s4136_s27 = scalar_select %p339_p10, %s4098_s13, 1  ;;  %2033 = vmatprep.subr.mxu1 %v5796_v37  ;;  %v1960_v39 = vld [vmem:[%s5790_s4 + $0x110] sm:$0xff]  ;;  %v1959_v40 = vld [vmem:[%s5790_s4 + $0x108] sm:$0xff]  ;;  %v1958_v41 = vld [vmem:[%s5790_s4 + $0x100] sm:$0xff]  ;;  %vm949_vm3 = vcmask 1046528   ;;  %vm1030_vm4 = vcmask 1045504  }
  0x16   : > { %3296 = vmatprep.subr.mxu0 %v383_v1  ;;  %v1941_v42 = vld [vmem:[%s5790_s4 + $0x78] sm:$0xff]  ;;  %v1940_v43 = vld [vmem:[%s5790_s4 + $0x70] sm:$0xff]  ;;  %v1939_v44 = vld [vmem:[%s5790_s4 + $0x68] sm:$0xff]  ;;  %vm1731_vm5 = vcmask 261120   ;;  %s4022_s22 = smov 96   ;;  %s4023_s23 = smov 64  }
  0x17   : > { %3297 = vmatpush3.msra.mxu0 %v383_v1  ;;  %s3143_s14 = sshll.u32 %s4136_s27, 8  ;;  %2034 = vmatpush1.msra.mxu1 %v1941_v42  ;;  %v1938_v45 = vld [vmem:[%s5790_s4 + $0x60] sm:$0xff]  ;;  %v1937_v46 = vld [vmem:[%s5790_s4 + $0x58] sm:$0xff]  ;;  %v1936_v47 = vld [vmem:[%s5790_s4 + $0x50] sm:$0xff]  ;;  %vm1764_vm6 = vcmask 523264   ;;  %vm1797_vm7 = vcmask 785408  }
  0x18   : > { %3298 = vmatprep.subr.mxu0 %v382_v2  ;;  %s4145_s21 = scalar_lea.vmem %s5786_s0, %s3143_s14  ;;  %2035 = vmatprep.subr.mxu1 %v5796_v37  ;;  %v1935_v48 = vld [vmem:[%s5790_s4 + $0x48] sm:$0xff]  ;;  %v1934_v49 = vld [vmem:[%s5790_s4 + $0x40] sm:$0xff]  ;;  %v1933_v50 = vld [vmem:[%s5790_s4 + $0x38] sm:$0xff]  ;;  %s3034_s24 = sshll.u32 %s4136_s27, 3  ;;  %vm4025_vm8 = vmmov 0   ;;  %vm2526_vm9 = vcmask 130048  }
  0x19   : > { %3299 = vmatpush3.msra.mxu0 %v382_v2  ;;  %v348_v5 = vld [vmem:[%s4145_s21] sm:$0xff]  ;;  %v349_v6 = vld [vmem:[%s4145_s21 + $0x8] sm:$0xff]  ;;  %v350_v7 = vld [vmem:[%s4145_s21 + $0x10] sm:$0xff]  ;;  %2036 = vmatpush1.msra.mxu1 %v1940_v43  ;;  %s347_s26 = scalar_lea.vmem %s5787_s1, %s3034_s24  ;;  %s336_s14 = sand.u32 1, %s4010_s10  }
  0x1a   : > { %3300 = vmatprep.subr.mxu0 %v381_v3  ;;  %3304 = vmatprep.mubr.msk.f32.mxu0 %vm392_vm1, %v348_v5  ;;  %v351_v8 = vld [vmem:[%s4145_s21 + $0x18] sm:$0xff]  ;;  %v352_v9 = vld [vmem:[%s4145_s21 + $0x20] sm:$0xff]  ;;  %v353_v10 = vld [vmem:[%s4145_s21 + $0x28] sm:$0xff]  ;;  %v4336_v5 = vrot.slane %v5796_v37, 7  ;;  %s3031_s16 = sshll.u32 %s336_s14, 3  ;;  %s2943_s28 = scalar_lea.sflag [#allocation3], %s336_s14 }
  0x1b   : > { %3301 = vmatpush3.msra.mxu0 %v381_v3  ;;  %v354_v11 = vld [vmem:[%s4145_s21 + $0x30] sm:$0xff]  ;;  %v355_v12 = vld [vmem:[%s4145_s21 + $0x38] sm:$0xff]  ;;  %v356_v13 = vld [vmem:[%s4145_s21 + $0x40] sm:$0xff]  ;;  %2037 = vmatprep.subr.mxu1 %v5796_v37 }
  0x1c   : > { %3302 = vmatprep.subr.mxu0 %v380_v4  ;;  %v357_v14 = vld [vmem:[%s4145_s21 + $0x48] sm:$0xff]  ;;  %v358_v15 = vld [vmem:[%s4145_s21 + $0x50] sm:$0xff]  ;;  %v359_v16 = vld [vmem:[%s4145_s21 + $0x58] sm:$0xff]  ;;  %2038 = vmatpush1.msra.mxu1 %v1939_v44 }
  0x1d   : > { %3303 = vmatpush3.msra.mxu0 %v380_v4  ;;  %v360_v17 = vld [vmem:[%s4145_s21 + $0x60] sm:$0xff]  ;;  %v361_v18 = vld [vmem:[%s4145_s21 + $0x68] sm:$0xff]  ;;  %v362_v19 = vld [vmem:[%s4145_s21 + $0x70] sm:$0xff]  ;;  %2039 = vmatprep.subr.mxu1 %v5796_v37 }
  0x1e   : > { %3305 = vmatmul.mubr.msk.f32.vlgmr.msra.gmra.mxu0 %vm392_vm1, %v349_v6  ;;  %v363_v20 = vld [vmem:[%s4145_s21 + $0x78] sm:$0xff]  ;;  %v364_v21 = vld [vmem:[%s4145_s21 + $0x80] sm:$0xff]  ;;  %v365_v22 = vld [vmem:[%s4145_s21 + $0x88] sm:$0xff]  ;;  %3352 = vmatprep.subr.mxu0 %v1961_v38 }
  0x1f   : > { %3307 = vmatprep.mubr.msk.f32.mxu0 %vm392_vm1, %v350_v7  ;;  %v366_v23 = vld [vmem:[%s4145_s21 + $0x90] sm:$0xff]  ;;  %v367_v24 = vld [vmem:[%s4145_s21 + $0x98] sm:$0xff]  ;;  %v368_v25 = vld [vmem:[%s4145_s21 + $0xa0] sm:$0xff]  ;;  %3353 = vmatpush3.msra.mxu0 %v1961_v38 }
  0x20   : > { %v369_v26 = vld [vmem:[%s4145_s21 + $0xa8] sm:$0xff]  ;;  %v370_v27 = vld [vmem:[%s4145_s21 + $0xb0] sm:$0xff]  ;;  %v371_v28 = vld [vmem:[%s4145_s21 + $0xb8] sm:$0xff]  ;;  %3354 = vmatprep.subr.mxu0 %v1960_v39  ;;  %2040 = vmatpush1.msra.mxu1 %v1938_v45 }
  0x21   : > { %v372_v29 = vld [vmem:[%s4145_s21 + $0xc0] sm:$0xff]  ;;  %v373_v30 = vld [vmem:[%s4145_s21 + $0xc8] sm:$0xff]  ;;  %v374_v31 = vld [vmem:[%s4145_s21 + $0xd0] sm:$0xff]  ;;  %3355 = vmatpush3.msra.mxu0 %v1960_v39  ;;  %2041 = vmatprep.subr.mxu1 %v5796_v37 }
  0x22   : > { %3308 = vmatmul.mubr.msk.f32.gmra.mxu0 %vm392_vm1, %v351_v8  ;;  %v375_v32 = vld [vmem:[%s4145_s21 + $0xd8] sm:$0xff]  ;;  %v376_v33 = vld [vmem:[%s4145_s21 + $0xe0] sm:$0xff]  ;;  %v377_v34 = vld [vmem:[%s4145_s21 + $0xe8] sm:$0xff]  ;;  %3356 = vmatprep.subr.mxu0 %v1959_v40 }
  0x23   : > { %3310 = vmatprep.mubr.msk.f32.mxu0 %vm392_vm1, %v352_v9  ;;  %v378_v35 = vld [vmem:[%s4145_s21 + $0xf0] sm:$0xff]  ;;  %v379_v36 = vld [vmem:[%s4145_s21 + $0xf8] sm:$0xff]  ;;  %3357 = vmatpush3.msra.mxu0 %v1959_v40  ;;  %v1931_v52 = vld [vmem:[%s5790_s4 + $0x28] sm:$0xff]  ;;  %s4021_s21 = smov 32  }
  0x24   : > { %3358 = vmatprep.subr.mxu0 %v1958_v41  ;;  %2042 = vmatpush1.msra.mxu1 %v1937_v46  ;;  %v1932_v51 = vld [vmem:[%s5790_s4 + $0x30] sm:$0xff]  ;;  %v1930_v53 = vld [vmem:[%s5790_s4 + $0x20] sm:$0xff]  ;;  %v1929_v54 = vld [vmem:[%s5790_s4 + $0x18] sm:$0xff] }
  0x25   : > { %3359 = vmatpush3.msra.mxu0 %v1958_v41  ;;  %2043 = vmatprep.subr.mxu1 %v5796_v37  ;;  %v1928_v55 = vld [vmem:[%s5790_s4 + $0x10] sm:$0xff]  ;;  %v1927_v56 = vld [vmem:[%s5790_s4 + $0x8] sm:$0xff]  ;;  %v1926_v57 = vld [vmem:[%s5790_s4] sm:$0xff] }
  0x26   : > { %3311 = vmatmul.mubr.msk.f32.gmra.mxu0 %vm392_vm1, %v353_v10  ;;  %3408 = vmatprep.subr.mxu0 %v5796_v37  ;;  %v1957_v58 = vld [vmem:[%s5790_s4 + $0xf8] sm:$0xff]  ;;  %v1956_v59 = vld [vmem:[%s5790_s4 + $0xf0] sm:$0xff]  ;;  %v1955_v60 = vld [vmem:[%s5790_s4 + $0xe8] sm:$0xff] }
  0x27   : > { %3313 = vmatprep.mubr.msk.f32.mxu0 %vm392_vm1, %v354_v11  ;;  %2044 = vmatpush1.msra.mxu1 %v1936_v47  ;;  %v1954_v61 = vld [vmem:[%s5790_s4 + $0xe0] sm:$0xff]  ;;  %v1953_v62 = vld [vmem:[%s5790_s4 + $0xd8] sm:$0xff]  ;;  %v1952_v63 = vld [vmem:[%s5790_s4 + $0xd0] sm:$0xff] }
  0x28   : > { %2045 = vmatprep.subr.mxu1 %v5796_v37  ;;  %v1951_v0 = vld [vmem:[%s5790_s4 + $0xc8] sm:$0xff]  ;;  %v1950_v1 = vld [vmem:[%s5790_s4 + $0xc0] sm:$0xff]  ;;  %v1949_v3 = vld [vmem:[%s5790_s4 + $0xb8] sm:$0xff] }
  0x29   : > { %2046 = vmatpush1.msra.mxu1 %v1935_v48  ;;  %v4326_v2 = vld [vmem:[%s5789_s3] ss:$0 sm:$0xff]  ;;  %v1948_v4 = vld [vmem:[%s5790_s4 + $0xb0] sm:$0xff]  ;;  %v1947_v9 = vld [vmem:[%s5790_s4 + $0xa8] sm:$0xff] }
  0x2a   : > { %3314 = vmatmul.mubr.msk.f32.gmra.mxu0 %vm392_vm1, %v355_v12  ;;  %2047 = vmatprep.subr.mxu1 %v5796_v37  ;;  %v4347_v12 = vsel %vm783_vm2, %v4336_v5, 0.0  ;;  %v1943_v40 = vld [vmem:[%s5790_s4 + $0x88] sm:$0xff] }
  0x2b   : > { %3316 = vmatprep.mubr.msk.f32.mxu0 %vm392_vm1, %v356_v13  ;;  %2048 = vmatpush1.msra.mxu1 %v1934_v49  ;;  %v4351_v13 = vsel %vm783_vm2, 0.0, %v4336_v5 }
  0x2c   : > { %2049 = vmatprep.subr.mxu1 %v5796_v37  ;;  %v1031_v49 = vrot.slane %v4351_v13, 2 }
  0x2d   : > { %2050 = vmatpush1.msra.mxu1 %v1933_v50 }
  0x2e   : > { %3317 = vmatmul.mubr.msk.f32.gmra.mxu0 %vm392_vm1, %v357_v14  ;;  %2051 = vmatprep.subr.mxu1 %v5796_v37 }
  0x2f   : > { %3319 = vmatprep.mubr.msk.f32.mxu0 %vm392_vm1, %v358_v15  ;;  %2052 = vmatpush1.msra.mxu1 %v1932_v51  ;;  %v1946_v15 = vld [vmem:[%s5790_s4 + $0xa0] sm:$0xff] }
  0x30   : > { %2053 = vmatprep.subr.mxu1 %v5796_v37 }
  0x31   : > { %2054 = vmatpush1.msra.mxu1 %v1931_v52 }
  0x32   : > { %3320 = vmatmul.mubr.msk.f32.gmra.mxu0 %vm392_vm1, %v359_v16  ;;  %2055 = vmatprep.subr.mxu1 %v5796_v37 }
  0x33   : > { %3322 = vmatprep.mubr.msk.f32.mxu0 %vm392_vm1, %v360_v17  ;;  %2056 = vmatpush1.msra.mxu1 %v1930_v53  ;;  %v1032_v53 = vrot.slane %v4336_v5, 2 }
  0x34   : > { %2057 = vmatprep.subr.mxu1 %v5796_v37 }
  0x35   : > { %2058 = vmatpush1.msra.mxu1 %v1929_v54  ;;  %v1942_v54 = vld [vmem:[%s5790_s4 + $0x80] sm:$0xff] }
  0x36   : > { %3323 = vmatmul.mubr.msk.f32.gmra.mxu0 %vm392_vm1, %v361_v18  ;;  %2059 = vmatprep.subr.mxu1 %v5796_v37 }
  0x37   : > { %3325 = vmatprep.mubr.msk.f32.mxu0 %vm392_vm1, %v362_v19  ;;  %2060 = vmatpush1.msra.mxu1 %v1928_v55 }
  0x38   : > { %2061 = vmatprep.subr.mxu1 %v5796_v37 }
  0x39   : > { %2062 = vmatpush1.msra.mxu1 %v1927_v56 }
  0x3a   : > { %3326 = vmatmul.mubr.msk.f32.gmra.mxu0 %vm392_vm1, %v363_v20  ;;  %2063 = vmatprep.subr.mxu1 %v5796_v37  ;;  %v951_v20 = vrot.slane %v4336_v5, 1 }
  0x3b   : > { %3328 = vmatprep.mubr.msk.f32.mxu0 %vm392_vm1, %v364_v21  ;;  %2064 = vmatpush1.msra.mxu1 %v1926_v57  ;;  %v953_v21 = vrot.slane %v4347_v12, 1  ;;  %v1034_v57 = vrot.slane %v4347_v12, 2 }
  0x3c   : > { %2065 = vmatprep.subr.mxu1 %v5796_v37 }
  0x3d   : > { %2066 = vmatpush2.msra.mxu1 %v1957_v58  ;;  %v4388_v43 = vsel %vm949_vm3, %v951_v20, %v953_v21 }
  0x3e   : > { %3329 = vmatmul.mubr.msk.f32.gmra.mxu0 %vm392_vm1, %v365_v22  ;;  %2067 = vmatprep.subr.mxu1 %v5796_v37  ;;  %v950_v22 = vrot.slane %v4351_v13, 1  ;;  %5840 = vst [vmem:[#allocation7_spill] sm:$0xff] %v4388_v43 }
  0x3f   : > { %3331 = vmatprep.mubr.msk.f32.mxu0 %vm392_vm1, %v366_v23  ;;  %2068 = vmatpush2.msra.mxu1 %v1956_v59  ;;  %v1945_v23 = vld [vmem:[%s5790_s4 + $0x98] sm:$0xff] }
  0x40   : > { %2069 = vmatprep.subr.mxu1 %v5796_v37  ;;  %v4391_v44 = vsel %vm949_vm3, %v950_v22, %v951_v20  ;;  %v4448_v20 = vsel %vm1030_vm4, %v1032_v53, %v1034_v57 }
  0x41   : > { %2070 = vmatpush2.msra.mxu1 %v1955_v60  ;;  %5841 = vst [vmem:[#allocation8_spill] sm:$0xff] %v4391_v44 }
  0x42   : > { %3332 = vmatmul.mubr.msk.f32.gmra.mxu0 %vm392_vm1, %v367_v24  ;;  %2071 = vmatprep.subr.mxu1 %v5796_v37 }
  0x43   : > { %3334 = vmatprep.mubr.msk.f32.mxu0 %vm392_vm1, %v368_v25  ;;  %2072 = vmatpush2.msra.mxu1 %v1954_v61 }
  0x44   : > { %2073 = vmatprep.subr.mxu1 %v5796_v37 }
  0x45   : > { %2074 = vmatpush2.msra.mxu1 %v1953_v62 }
  0x46   : > { %3335 = vmatmul.mubr.msk.f32.gmra.mxu0 %vm392_vm1, %v369_v26  ;;  %2075 = vmatprep.subr.mxu1 %v5796_v37 }
  0x47   : > { %3337 = vmatprep.mubr.msk.f32.mxu0 %vm392_vm1, %v370_v27  ;;  %2076 = vmatpush2.msra.mxu1 %v1952_v63 }
  0x48   : > { %2077 = vmatprep.subr.mxu1 %v5796_v37 }
  0x49   : > { %2078 = vmatpush2.msra.mxu1 %v1951_v0 }
  0x4a   : > { %3338 = vmatmul.mubr.msk.f32.gmra.mxu0 %vm392_vm1, %v371_v28  ;;  %2079 = vmatprep.subr.mxu1 %v5796_v37 }
  0x4b   : > { %3340 = vmatprep.mubr.msk.f32.mxu0 %vm392_vm1, %v372_v29  ;;  %2080 = vmatpush2.msra.mxu1 %v1950_v1 }
  0x4c   : > { %2081 = vmatprep.subr.mxu1 %v5796_v37 }
  0x4d   : > { %2082 = vmatpush2.msra.mxu1 %v1949_v3 }
  0x4e   : > { %3341 = vmatmul.mubr.msk.f32.gmra.mxu0 %vm392_vm1, %v373_v30  ;;  %2083 = vmatprep.subr.mxu1 %v5796_v37 }
  0x4f   : > { %3343 = vmatprep.mubr.msk.f32.mxu0 %vm392_vm1, %v374_v31  ;;  %2084 = vmatpush2.msra.mxu1 %v1948_v4 }
  0x50   : > { %2085 = vmatprep.subr.mxu1 %v5796_v37 }
  0x51   : > { %2086 = vmatpush2.msra.mxu1 %v1947_v9 }
  0x52   : > { %3344 = vmatmul.mubr.msk.f32.gmra.mxu0 %vm392_vm1, %v375_v32  ;;  %2087 = vmatprep.subr.mxu1 %v5796_v37 }
  0x53   : > { %3346 = vmatprep.mubr.msk.f32.mxu0 %vm392_vm1, %v376_v33  ;;  %2088 = vmatpush2.msra.mxu1 %v1946_v15  ;;  %v1944_v33 = vld [vmem:[%s5790_s4 + $0x90] sm:$0xff] }
  0x54   : > { %2089 = vmatprep.subr.mxu1 %v5796_v37 }
  0x55   : > { %2090 = vmatpush2.msra.mxu1 %v1945_v23 }
  0x56   : > { %3347 = vmatmul.mubr.msk.f32.gmra.mxu0 %vm392_vm1, %v377_v34  ;;  %2091 = vmatprep.subr.mxu1 %v5796_v37 }
  0x57   : > { %3349 = vmatprep.mubr.msk.f32.mxu0 %vm392_vm1, %v378_v35  ;;  %2092 = vmatpush2.msra.mxu1 %v1944_v33 }
  0x58   : > { %2093 = vmatprep.subr.mxu1 %v5796_v37 }
  0x59   : > { %2094 = vmatpush2.msra.mxu1 %v1943_v40 }
  0x5a   : > { %3350 = vmatmul.mubr.msk.f32.gmra.mxu0 %vm392_vm1, %v379_v36  ;;  %2095 = vmatprep.subr.mxu1 %v5796_v37 }
  0x5b   : > { %2096 = vmatpush2.msra.mxu1 %v1942_v54 }
  0xde   : > { %v3306_v6 = vpop.f32.mrf.mxu0 }
  0xdf   : > { %v565_v7 = vadd.f32 %v3306_v6, %v4326_v2 }
  0xe0   : > { %v559_v8 = vpop.f32.mrf.mxu0 }
  0xe1   : > { %v719_v10 = vmax.f32 %v565_v7, 0.0  ;;  %v560_v11 = vadd.f32 %v4326_v2, %v559_v8  ;;  %v4427_v8 = vsel %vm1030_vm4, %v1031_v49, %v1032_v53 }
  0xe2   : > { %v3309_v14 = vpop.f32.mrf.mxu0 }
  0xe3   : > { %v787_v16 = vrot.slane %v719_v10, 7  ;;  %v718_v17 = vmax.f32 %v560_v11, 0.0  ;;  %v575_v18 = vadd.f32 %v3309_v14, %v4326_v2 }
  0xe4   : > { %v569_v19 = vpop.f32.mrf.mxu0 }
  0xe5   : > { %v4366_v24 = vsel %vm783_vm2, %v787_v16, 0.0  ;;  %v786_v25 = vrot.slane %v718_v17, 7  ;;  %v721_v26 = vmax.f32 %v575_v18, 0.0  ;;  %v570_v27 = vadd.f32 %v4326_v2, %v569_v19 }
  0xe6   : > { %v3312_v28 = vpop.f32.mrf.mxu0  ;;  %v1039_v34 = vrot.slane %v4366_v24, 2 }
  0xe7   : > { %v4371_v29 = vsel %vm783_vm2, %v786_v25, %v787_v16  ;;  %v4374_v30 = vsel %vm783_vm2, 0.0, %v786_v25  ;;  %v790_v31 = vrot.slane %v721_v26, 7  ;;  %v720_v32 = vmax.f32 %v570_v27, 0.0 }
  0xe8   : > { %5838 = vst [vmem:[#allocation5_spill] sm:$0xff] %v4371_v29  ;;  %5839 = vst [vmem:[#allocation6_spill] sm:$0xff] %v4374_v30  ;;  %v585_v35 = vadd.f32 %v3312_v28, %v4326_v2  ;;  %v579_v36 = vpop.f32.mrf.mxu0  ;;  %v1037_v38 = vrot.slane %v4371_v29, 2  ;;  %v1036_v39 = vrot.slane %v4374_v30, 2  ;;  %v955_v27 = vrot.slane %v4374_v30, 1 }
  0xe9   : > { %v789_v41 = vrot.slane %v720_v32, 7  ;;  %v580_v42 = vadd.f32 %v4326_v2, %v579_v36  ;;  %v902_v45 = vsel %vm783_vm2, %v790_v31, 0.0 }
  0xea   : > { %v723_v46 = vmax.f32 %v585_v35, 0.0  ;;  %v3315_v47 = vpop.f32.mrf.mxu0  ;;  %v4396_v48 = vsel %vm1030_vm4, %v1037_v38, %v1039_v34  ;;  %v4415_v59 = vsel %vm1030_vm4, %v1036_v39, %v1037_v38  ;;  %v1044_v60 = vrot.slane %v902_v45, 2 }
  0xeb   : > { %v4400_v50 = vsel %vm783_vm2, %v789_v41, %v790_v31  ;;  %v4403_v51 = vsel %vm783_vm2, 0.0, %v789_v41  ;;  %v722_v52 = vmax.f32 %v580_v42, 0.0  ;;  %v595_v55 = vadd.f32 %v3315_v47, %v4326_v2 }
  0xec   : > { %5842 = vst [vmem:[#allocation9_spill] sm:$0xff] %v4400_v50  ;;  %5843 = vst [vmem:[#allocation10_spill] sm:$0xff] %v4403_v51  ;;  %v589_v56 = vpop.f32.mrf.mxu0  ;;  %v3476_v58 = vpack.i.bf16 %v4388_v43, %v4396_v48  ;;  %v960_v61 = vrot.slane %v4403_v51, 1  ;;  %v3471_v63 = vpack.i.bf16 %v4391_v44, %v4415_v59  ;;  %v793_v0 = vrot.slane %v723_v46, 7 }
  0xed   : > { %v590_v62 = vadd.f32 %v4326_v2, %v589_v56  ;;  %v1041_v1 = vrot.slane %v4403_v51, 2  ;;  %v1042_v3 = vrot.slane %v4400_v50, 2  ;;  %v961_v4 = vrot.slane %v4400_v50, 1 }
  0xee   : > { %3477 = vrot.lane.b32.xlu1 %v3476_v58, %s4021_s21  ;;  %v3318_v6 = vpop.f32.mrf.mxu0  ;;  %v792_v7 = vrot.slane %v722_v52, 7  ;;  %3472 = vrot.lane.b32.xlu0 %v3471_v63, %s4021_s21  ;;  %v963_v9 = vrot.slane %v902_v45, 1  ;;  %v725_v10 = vmax.f32 %v595_v55, 0.0  ;;  %v4439_v17 = vsel %vm783_vm2, %v793_v0, 0.0 }
  0xef   : > { %v724_v12 = vmax.f32 %v590_v62, 0.0  ;;  %v4430_v14 = vsel %vm1030_vm4, %v1041_v1, %v1042_v3  ;;  %v4433_v15 = vsel %vm1030_vm4, %v1042_v3, %v1044_v60  ;;  %v4436_v16 = vsel %vm949_vm3, %v960_v61, %v961_v4 }
  0xf0   : > { %v599_v11 = vpop.f32.mrf.mxu0  ;;  %5844 = vst [vmem:[#allocation11_spill] sm:$0xff] %v4436_v16  ;;  %3360 = vmatprep.mubr.msk.f32.mxu0 %vm1731_vm5, %v4430_v14  ;;  %v3491_v18 = vpack.i.bf16 %v4374_v30, %v4436_v16  ;;  %v3481_v19 = vpack.i.bf16 %v4427_v8, %v4403_v51  ;;  %v4451_v22 = vsel %vm783_vm2, %v792_v7, %v793_v0  ;;  %v4454_v23 = vsel %vm783_vm2, 0.0, %v792_v7 }
  0xf1   : > { %5845 = vst [vmem:[#allocation12_spill] sm:$0xff] %v4451_v22  ;;  %5846 = vst [vmem:[#allocation13_spill] sm:$0xff] %v4454_v23  ;;  %3361 = vmatmul.mubr.msk.f32.vlgmr.msra.gmra.mxu0 %vm1731_vm5, %v4433_v15  ;;  %v605_v25 = vadd.f32 %v3318_v6, %v4326_v2  ;;  %v600_v26 = vadd.f32 %v4326_v2, %v599_v11  ;;  %v4464_v28 = vsel %vm949_vm3, %v961_v4, %v963_v9 }
  0xf2   : > { %v3321_v21 = vpop.f32.mrf.mxu0  ;;  %3492 = vrot.lane.b32.xlu1 %v3491_v18, %s4022_s22  ;;  %3482 = vrot.lane.b32.xlu0 %v3481_v19, %s4023_s23  ;;  %5847 = vst [vmem:[#allocation14_spill] sm:$0xff] %v4464_v28  ;;  %v1049_v31 = vrot.slane %v4439_v17, 2  ;;  %v796_v32 = vrot.slane %v725_v10, 7  ;;  %v795_v33 = vrot.slane %v724_v12, 7  ;;  %v956_v34 = vrot.slane %v4371_v29, 1 }
  0xf3   : > { %v3496_v35 = vpack.i.bf16 %v4371_v29, %v4464_v28  ;;  %v3486_v36 = vpack.i.bf16 %v4448_v20, %v4400_v50  ;;  %v1046_v38 = vrot.slane %v4454_v23, 2  ;;  %v1047_v39 = vrot.slane %v4451_v22, 2 }
  0xf4   : > { %v609_v40 = vpop.f32.mrf.mxu0  ;;  %v958_v41 = vrot.slane %v4366_v24, 1  ;;  %v968_v42 = vrot.slane %v4439_v17, 1  ;;  %v727_v45 = vmax.f32 %v605_v25, 0.0  ;;  %v726_v46 = vmax.f32 %v600_v26, 0.0 }
  0xf5   : > { %v965_v47 = vrot.slane %v4454_v23, 1  ;;  %v4478_v49 = vsel %vm783_vm2, %v796_v32, 0.0  ;;  %v4483_v52 = vsel %vm1030_vm4, %v1046_v38, %v1047_v39  ;;  %v615_v53 = vadd.f32 %v3321_v21, %v4326_v2 }
  0xf6   : > { %3497 = vrot.lane.b32.xlu1 %v3496_v35, %s4022_s22  ;;  %3487 = vrot.lane.b32.xlu0 %v3486_v36, %s4023_s23  ;;  %v3324_v54 = vpop.f32.mrf.mxu0  ;;  %v4489_v24 = vsel %vm949_vm3, %v956_v34, %v958_v41  ;;  %v4492_v55 = vsel %vm949_vm3, %v955_v27, %v956_v34  ;;  %v4495_v56 = vsel %vm1030_vm4, %v1047_v39, %v1049_v31  ;;  %v4502_v60 = vsel %vm783_vm2, 0.0, %v795_v33 }
  0xf7   : > { %3363 = vmatprep.mubr.msk.f32.mxu0 %vm1731_vm5, %v4483_v52  ;;  %v610_v57 = vadd.f32 %v4326_v2, %v609_v40  ;;  %v4499_v58 = vsel %vm783_vm2, %v795_v33, %v796_v32  ;;  %5849 = vst [vmem:[#allocation16_spill] sm:$0xff] %v4502_v60  ;;  %v3506_v61 = vpack.i.bf16 %v4489_v24, %v4433_v15  ;;  %v799_v63 = vrot.slane %v727_v45, 7 }
  0xf8   : > { %5848 = vst [vmem:[#allocation15_spill] sm:$0xff] %v4499_v58  ;;  %v3501_v62 = vpack.i.bf16 %v4492_v55, %v4430_v14  ;;  %3364 = vmatmul.mubr.msk.f32.gmra.mxu0 %vm1731_vm5, %v4495_v56  ;;  %v798_v0 = vrot.slane %v726_v46, 7  ;;  %v966_v1 = vrot.slane %v4451_v22, 1  ;;  %v1051_v3 = vrot.slane %v4502_v60, 2  ;;  %v619_v10 = vpop.f32.mrf.mxu0 }
  0xf9   : > { %v1054_v4 = vrot.slane %v4478_v49, 2  ;;  %v729_v6 = vmax.f32 %v615_v53, 0.0  ;;  %v728_v7 = vmax.f32 %v610_v57, 0.0  ;;  %v1052_v9 = vrot.slane %v4499_v58, 2 }
  0xfa   : > { %3507 = vrot.lane.b32.xlu1 %v3506_v61, %s4021_s21  ;;  %3502 = vrot.lane.b32.xlu0 %v3501_v62, %s4021_s21  ;;  %v3516_v11 = vpack.i.bf16 %v4396_v48, %v4451_v22  ;;  %v3511_v12 = vpack.i.bf16 %v4415_v59, %v4454_v23  ;;  %v4521_v17 = vsel %vm783_vm2, %v799_v63, 0.0  ;;  %v3327_v19 = vpop.f32.mrf.mxu0  ;;  %v4527_v21 = vsel %vm783_vm2, %v798_v0, %v799_v63 }
  0xfb   : > { %v4524_v18 = vsel %vm1030_vm4, %v1051_v3, %v1052_v9  ;;  %5850 = vst [vmem:[#allocation17_spill] sm:$0xff] %v4527_v21  ;;  %v4530_v25 = vsel %vm783_vm2, 0.0, %v798_v0  ;;  %v4533_v26 = vsel %vm949_vm3, %v966_v1, %v968_v42  ;;  %v4536_v48 = vsel %vm949_vm3, %v965_v47, %v966_v1 }
  0xfc   : > { %5851 = vst [vmem:[#allocation18_spill] sm:$0xff] %v4530_v25  ;;  %5852 = vst [vmem:[#allocation19_spill] sm:$0xff] %v4533_v26  ;;  %3366 = vmatprep.mubr.msk.f32.mxu0 %vm1731_vm5, %v4524_v18  ;;  %v1059_v59 = vrot.slane %v4521_v17, 2  ;;  %v802_v27 = vrot.slane %v729_v6, 7  ;;  %v801_v31 = vrot.slane %v728_v7, 7  ;;  %v4544_v32 = vsel %vm1030_vm4, %v1052_v9, %v1054_v4  ;;  %v629_v41 = vpop.f32.mrf.mxu0 }
  0xfd   : > { %5853 = vst [vmem:[#allocation20_spill] sm:$0xff] %v4536_v48  ;;  %3367 = vmatmul.mubr.msk.f32.gmra.mxu0 %vm1731_vm5, %v4544_v32  ;;  %v625_v33 = vadd.f32 %v3324_v54, %v4326_v2  ;;  %v620_v34 = vadd.f32 %v4326_v2, %v619_v10  ;;  %v1056_v35 = vrot.slane %v4530_v25, 2  ;;  %v1057_v36 = vrot.slane %v4527_v21, 2 }
  0xfe   : > { %3512 = vrot.lane.b32.xlu1 %v3511_v12, %s4023_s23  ;;  %3517 = vrot.lane.b32.xlu0 %v3516_v11, %s4023_s23  ;;  %v973_v38 = vrot.slane %v4478_v49, 1  ;;  %v3526_v39 = vpack.i.bf16 %v4400_v50, %v4533_v26  ;;  %v3521_v40 = vpack.i.bf16 %v4403_v51, %v4536_v48  ;;  %v970_v42 = vrot.slane %v4502_v60, 1  ;;  %v3330_v61 = vpop.f32.mrf.mxu0 }
  0xff   : > { %v4559_v45 = vsel %vm783_vm2, %v802_v27, 0.0  ;;  %v3536_v46 = vpack.i.bf16 %v4464_v28, %v4495_v56  ;;  %v3531_v47 = vpack.i.bf16 %v4436_v16, %v4483_v52  ;;  %v4566_v49 = vsel %vm783_vm2, %v801_v31, %v802_v27 }
 0x100   : > { %5854 = vst [vmem:[#allocation21_spill] sm:$0xff] %v4566_v49  ;;  %v4569_v53 = vsel %vm783_vm2, 0.0, %v801_v31  ;;  %v971_v54 = vrot.slane %v4499_v58, 1  ;;  %v4575_v57 = vsel %vm1030_vm4, %v1056_v35, %v1057_v36  ;;  %v731_v62 = vmax.f32 %v625_v33, 0.0  ;;  %v639_v11 = vpop.f32.mrf.mxu0 }
 0x101   : > { %5855 = vst [vmem:[#allocation22_spill] sm:$0xff] %v4569_v53  ;;  %v730_v63 = vmax.f32 %v620_v34, 0.0  ;;  %3369 = vmatprep.mubr.msk.f32.mxu0 %vm1731_vm5, %v4575_v57  ;;  %v4580_v0 = vsel %vm1030_vm4, %v1057_v36, %v1059_v59  ;;  %v1061_v1 = vrot.slane %v4569_v53, 2  ;;  %v1064_v3 = vrot.slane %v4559_v45, 2 }
 0x102   : > { %3527 = vrot.lane.b32.xlu1 %v3526_v39, %s4022_s22  ;;  %3522 = vrot.lane.b32.xlu0 %v3521_v40, %s4022_s22  ;;  %v635_v4 = vadd.f32 %v3327_v19, %v4326_v2  ;;  %v630_v6 = vadd.f32 %v4326_v2, %v629_v41  ;;  %v1062_v7 = vrot.slane %v4566_v49, 2  ;;  %v3541_v9 = vpack.i.bf16 %v4430_v14, %v4502_v60  ;;  %v3333_v36 = vpop.f32.mrf.mxu0 }
 0x103   : > { %3370 = vmatmul.mubr.msk.f32.gmra.mxu0 %vm1731_vm5, %v4580_v0  ;;  %v3546_v12 = vpack.i.bf16 %v4433_v15, %v4499_v58  ;;  %v805_v59 = vrot.slane %v731_v62, 7  ;;  %v804_v19 = vrot.slane %v730_v63, 7  ;;  %v4599_v27 = vsel %vm949_vm3, %v971_v54, %v973_v38 }
 0x104   : > { %v4594_v10 = vsel %vm1030_vm4, %v1061_v1, %v1062_v7  ;;  %5856 = vst [vmem:[#allocation23_spill] sm:$0xff] %v4599_v27  ;;  %v4604_v31 = vsel %vm949_vm3, %v970_v42, %v971_v54  ;;  %v733_v33 = vmax.f32 %v635_v4, 0.0  ;;  %v732_v14 = vmax.f32 %v630_v6, 0.0 }
 0x105   : > { %3372 = vmatprep.mubr.msk.f32.mxu0 %vm1731_vm5, %v4594_v10  ;;  %5857 = vst [vmem:[#allocation24_spill] sm:$0xff] %v4604_v31  ;;  %v4607_v34 = vsel %vm1030_vm4, %v1062_v7, %v1064_v3  ;;  %v645_v15 = vadd.f32 %v3330_v61, %v4326_v2  ;;  %v640_v35 = vadd.f32 %v4326_v2, %v639_v11  ;;  %v4616_v38 = vsel %vm783_vm2, %v805_v59, 0.0  ;;  %v649_v3 = vpop.f32.mrf.mxu0 }
 0x106   : > { %3537 = vrot.lane.b32.xlu1 %v3536_v46, %s4021_s21  ;;  %3532 = vrot.lane.b32.xlu0 %v3531_v47, %s4021_s21  ;;  %v3556_v39 = vpack.i.bf16 %v4451_v22, %v4599_v27  ;;  %v1069_v40 = vrot.slane %v4616_v38, 2  ;;  %v4622_v41 = vsel %vm783_vm2, %v804_v19, %v805_v59  ;;  %v4625_v42 = vsel %vm783_vm2, 0.0, %v804_v19 }
 0x107   : > { %3373 = vmatmul.mubr.msk.f32.gmra.mxu0 %vm1731_vm5, %v4607_v34  ;;  %5858 = vst [vmem:[#allocation25_spill] sm:$0xff] %v4622_v41  ;;  %5859 = vst [vmem:[#allocation26_spill] sm:$0xff] %v4625_v42  ;;  %v3551_v46 = vpack.i.bf16 %v4454_v23, %v4604_v31  ;;  %v808_v47 = vrot.slane %v733_v33, 7  ;;  %v807_v54 = vrot.slane %v732_v14, 7  ;;  %v1066_v61 = vrot.slane %v4625_v42, 2 }
 0x108   : > { %v1067_v62 = vrot.slane %v4622_v41, 2  ;;  %v735_v63 = vmax.f32 %v645_v15, 0.0  ;;  %v734_v1 = vmax.f32 %v640_v35, 0.0  ;;  %v978_v4 = vrot.slane %v4521_v17, 1 }
 0x109   : > { %v975_v7 = vrot.slane %v4530_v25, 1  ;;  %v3561_v11 = vpack.i.bf16 %v4536_v48, %v4524_v18  ;;  %v4648_v59 = vsel %vm783_vm2, %v808_v47, 0.0  ;;  %v4651_v19 = vsel %vm783_vm2, %v807_v54, %v808_v47 }
 0x10a   : > { %3542 = vrot.lane.b32.xlu1 %v3541_v9, %s4023_s23  ;;  %3547 = vrot.lane.b32.xlu0 %v3546_v12, %s4023_s23  ;;  %v4635_v6 = vsel %vm1030_vm4, %v1066_v61, %v1067_v62  ;;  %v3566_v9 = vpack.i.bf16 %v4533_v26, %v4544_v32  ;;  %v4645_v17 = vsel %vm1030_vm4, %v1067_v62, %v1069_v40  ;;  %v3336_v12 = vpop.f32.mrf.mxu0  ;;  %v4654_v33 = vsel %vm783_vm2, 0.0, %v807_v54 }
 0x10b   : > { %3375 = vmatprep.mubr.msk.f32.mxu0 %vm1731_vm5, %v4635_v6  ;;  %v976_v14 = vrot.slane %v4527_v21, 1  ;;  %v811_v15 = vrot.slane %v735_v63, 7  ;;  %v810_v35 = vrot.slane %v734_v1, 7  ;;  %v650_v40 = vadd.f32 %v4326_v2, %v649_v3 }
 0x10c   : > { %3376 = vmatmul.mubr.msk.f32.gmra.mxu0 %vm1731_vm5, %v4645_v17  ;;  %v1071_v47 = vrot.slane %v4654_v33, 2  ;;  %v1072_v54 = vrot.slane %v4651_v19, 2  ;;  %v3571_v61 = vpack.i.bf16 %v4483_v52, %v4530_v25  ;;  %v3576_v62 = vpack.i.bf16 %v4495_v56, %v4527_v21  ;;  %v659_v63 = vpop.f32.mrf.mxu0 }
 0x10d   : > { %v4674_v1 = vsel %vm949_vm3, %v975_v7, %v976_v14  ;;  %v4677_v3 = vsel %vm783_vm2, %v811_v15, 0.0  ;;  %v4686_v52 = vsel %vm783_vm2, 0.0, %v810_v35  ;;  %v736_v37 = vmax.f32 %v650_v40, 0.0 }
 0x10e   : > { %3557 = vrot.lane.b32.xlu1 %v3556_v39, %s4022_s22  ;;  %3552 = vrot.lane.b32.xlu0 %v3551_v46, %s4022_s22  ;;  %v655_v39 = vadd.f32 %v3333_v36, %v4326_v2  ;;  %v1074_v46 = vrot.slane %v4648_v59, 2  ;;  %v4671_v36 = vsel %vm949_vm3, %v976_v14, %v978_v4  ;;  %5861 = vst [vmem:[#allocation28_spill] sm:$0xff] %v4674_v1  ;;  %v1076_v14 = vrot.slane %v4686_v52, 2 }
 0x10f   : > { %5860 = vst [vmem:[#allocation27_spill] sm:$0xff] %v4671_v36  ;;  %v660_v7 = vadd.f32 %v4326_v2, %v659_v63  ;;  %v3586_v40 = vpack.i.bf16 %v4499_v58, %v4671_v36  ;;  %v983_v44 = vrot.slane %v4559_v45, 1  ;;  %v980_v58 = vrot.slane %v4569_v53, 1 }
 0x110   : > { %v737_v56 = vmax.f32 %v655_v39, 0.0  ;;  %v4693_v4 = vsel %vm1030_vm4, %v1072_v54, %v1074_v46  ;;  %v1079_v39 = vrot.slane %v4677_v3, 2  ;;  %v665_v46 = vadd.f32 %v3336_v12, %v4326_v2 }
 0x111   : > { %v3591_v12 = vpack.i.bf16 %v4604_v31, %v4575_v57 }
 0x112   : > { %3567 = vrot.lane.b32.xlu1 %v3566_v9, %s4021_s21  ;;  %3562 = vrot.lane.b32.xlu0 %v3561_v11, %s4021_s21  ;;  %v4680_v9 = vsel %vm1030_vm4, %v1071_v47, %v1072_v54  ;;  %v4683_v11 = vsel %vm783_vm2, %v810_v35, %v811_v15  ;;  %v3339_v35 = vpop.f32.mrf.mxu0  ;;  %v3581_v47 = vpack.i.bf16 %v4502_v60, %v4674_v1  ;;  %v814_v54 = vrot.slane %v737_v56, 7 }
 0x113   : > { %5862 = vst [vmem:[#allocation29_spill] sm:$0xff] %v4683_v11  ;;  %3378 = vmatprep.mubr.msk.f32.mxu0 %vm1731_vm5, %v4680_v9  ;;  %v1077_v15 = vrot.slane %v4683_v11, 2  ;;  %v3596_v60 = vpack.i.bf16 %v4599_v27, %v4580_v0  ;;  %v981_v56 = vrot.slane %v4566_v49, 1  ;;  %v739_v45 = vmax.f32 %v665_v46, 0.0 }
 0x114   : > { %3379 = vmatmul.mubr.msk.f32.gmra.mxu0 %vm1731_vm5, %v4693_v4  ;;  %v669_v43 = vpop.f32.mrf.mxu0  ;;  %v675_v22 = vadd.f32 %v3339_v35, %v4326_v2 }
 0x115   : > { %v4709_v63 = vsel %vm1030_vm4, %v1076_v14, %v1077_v15  ;;  %v670_v46 = vadd.f32 %v4326_v2, %v669_v43 }
 0x116   : > { %3572 = vrot.lane.b32.xlu1 %v3571_v61, %s4023_s23  ;;  %3577 = vrot.lane.b32.xlu0 %v3576_v62, %s4023_s23  ;;  %v813_v61 = vrot.slane %v736_v37, 7  ;;  %v738_v62 = vmax.f32 %v660_v7, 0.0  ;;  %v4718_v37 = vsel %vm1030_vm4, %v1077_v15, %v1079_v39  ;;  %v4724_v7 = vsel %vm783_vm2, %v814_v54, 0.0  ;;  %v3342_v14 = vpop.f32.mrf.mxu0 }
 0x117   : > { %3381 = vmatprep.mubr.msk.f32.mxu0 %vm1731_vm5, %v4709_v63 }
 0x118   : > { %3382 = vmatmul.mubr.msk.f32.gmra.mxu0 %vm1731_vm5, %v4718_v37  ;;  %v4733_v15 = vsel %vm783_vm2, 0.0, %v813_v61  ;;  %v816_v39 = vrot.slane %v738_v62, 7  ;;  %v4746_v62 = vsel %vm949_vm3, %v981_v56, %v983_v44  ;;  %v679_v43 = vpop.f32.mrf.mxu0  ;;  %v741_v44 = vmax.f32 %v675_v22, 0.0 }
 0x119   : > { %5864 = vst [vmem:[#allocation31_spill] sm:$0xff] %v4733_v15  ;;  %v1081_v27 = vrot.slane %v4733_v15, 2  ;;  %5865 = vst [vmem:[#allocation32_spill] sm:$0xff] %v4746_v62 }
 0x11a   : > { %3587 = vrot.lane.b32.xlu1 %v3586_v40, %s4022_s22  ;;  %3582 = vrot.lane.b32.xlu0 %v3581_v47, %s4022_s22  ;;  %v1084_v40 = vrot.slane %v4724_v7, 2  ;;  %v4730_v47 = vsel %vm783_vm2, %v813_v61, %v814_v54  ;;  %v3601_v54 = vpack.i.bf16 %v4524_v18, %v4569_v53  ;;  %v3606_v61 = vpack.i.bf16 %v4544_v32, %v4566_v49 }
 0x11b   : > { %5863 = vst [vmem:[#allocation30_spill] sm:$0xff] %v4730_v47  ;;  %v1082_v23 = vrot.slane %v4730_v47, 2  ;;  %v4759_v18 = vsel %vm783_vm2, 0.0, %v816_v39  ;;  %v740_v32 = vmax.f32 %v670_v46, 0.0  ;;  %v680_v46 = vadd.f32 %v4326_v2, %v679_v43 }
 0x11c   : > { %v820_v50 = vrot.slane %v741_v44, 7 }
 0x11d   : > { %v4752_v35 = vsel %vm1030_vm4, %v1081_v27, %v1082_v23  ;;  %v3616_v27 = vpack.i.bf16 %v4527_v21, %v4746_v62  ;;  %v988_v21 = vrot.slane %v4616_v38, 1  ;;  %v819_v26 = vrot.slane %v740_v32, 7 }
 0x11e   : > { %3597 = vrot.lane.b32.xlu1 %v3596_v60, %s4021_s21  ;;  %3592 = vrot.lane.b32.xlu0 %v3591_v12, %s4021_s21  ;;  %v4749_v60 = vsel %vm949_vm3, %v980_v58, %v981_v56  ;;  %v817_v12 = vrot.slane %v739_v45, 7  ;;  %v4762_v58 = vsel %vm1030_vm4, %v1082_v23, %v1084_v40  ;;  %v3345_v56 = vpop.f32.mrf.mxu0  ;;  %v685_v40 = vadd.f32 %v3342_v14, %v4326_v2 }
 0x11f   : > { %5866 = vst [vmem:[#allocation33_spill] sm:$0xff] %v4749_v60  ;;  %3384 = vmatprep.mubr.msk.f32.mxu0 %vm1731_vm5, %v4752_v35  ;;  %v3611_v45 = vpack.i.bf16 %v4530_v25, %v4749_v60  ;;  %v986_v25 = vrot.slane %v4622_v41, 1  ;;  %v3626_v14 = vpack.i.bf16 %v4671_v36, %v4607_v34  ;;  %v3621_v38 = vpack.i.bf16 %v4674_v1, %v4594_v10 }
 0x120   : > { %v4769_v31 = vsel %vm783_vm2, %v817_v12, 0.0  ;;  %3385 = vmatmul.mubr.msk.f32.gmra.mxu0 %vm1731_vm5, %v4762_v58  ;;  %v4776_v23 = vsel %vm783_vm2, %v816_v39, %v817_v12  ;;  %v689_v51 = vpop.f32.mrf.mxu0  ;;  %v985_v39 = vrot.slane %v4625_v42, 1  ;;  %v743_v43 = vmax.f32 %v685_v40, 0.0 }
 0x121   : > { %v1089_v22 = vrot.slane %v4769_v31, 2  ;;  %5867 = vst [vmem:[#allocation34_spill] sm:$0xff] %v4776_v23  ;;  %v3636_v36 = vpack.i.bf16 %v4580_v0, %v4622_v41  ;;  %v4813_v40 = vsel %vm783_vm2, %v819_v26, %v820_v50  ;;  %v695_v48 = vadd.f32 %v3345_v56, %v4326_v2 }
 0x122   : > { %3602 = vrot.lane.b32.xlu1 %v3601_v54, %s4023_s23  ;;  %3607 = vrot.lane.b32.xlu0 %v3606_v61, %s4023_s23  ;;  %v1086_v54 = vrot.slane %v4759_v18, 2  ;;  %v1087_v61 = vrot.slane %v4776_v23, 2  ;;  %v3348_v32 = vpop.f32.mrf.mxu0 }
 0x124   : > { %v4789_v12 = vsel %vm1030_vm4, %v1086_v54, %v1087_v61  ;;  %v4796_v44 = vsel %vm1030_vm4, %v1087_v61, %v1089_v22  ;;  %v4807_v54 = vsel %vm949_vm3, %v986_v25, %v988_v21  ;;  %v4810_v22 = vsel %vm783_vm2, %v820_v50, 0.0  ;;  %v699_v50 = vpop.f32.mrf.mxu0 }
 0x125   : > { %3387 = vmatprep.mubr.msk.f32.mxu0 %vm1731_vm5, %v4789_v12  ;;  %5868 = vst [vmem:[#allocation35_spill] sm:$0xff] %v4807_v54  ;;  %v1094_v0 = vrot.slane %v4810_v22, 2  ;;  %v4823_v21 = vsel %vm949_vm3, %v985_v39, %v986_v25 }
 0x126   : > { %3617 = vrot.lane.b32.xlu1 %v3616_v27, %s4022_s22  ;;  %3612 = vrot.lane.b32.xlu0 %v3611_v45, %s4022_s22  ;;  %v742_v27 = vmax.f32 %v680_v46, 0.0  ;;  %v3631_v45 = vpack.i.bf16 %v4575_v57, %v4625_v42  ;;  %v4816_v57 = vsel %vm783_vm2, 0.0, %v819_v26  ;;  %v690_v46 = vadd.f32 %v4326_v2, %v689_v51  ;;  %5869 = vst [vmem:[#allocation36_spill] sm:$0xff] %v4823_v21  ;;  %v3351_v25 = vpop.f32.mrf.mxu0 }
 0x127   : > { %3388 = vmatmul.mubr.msk.f32.gmra.mxu0 %vm1731_vm5, %v4796_v44  ;;  %v1091_v61 = vrot.slane %v4816_v57, 2  ;;  %v3646_v26 = vpack.i.bf16 %v4566_v49, %v4807_v54  ;;  %v3641_v39 = vpack.i.bf16 %v4569_v53, %v4823_v21  ;;  %v700_v49 = vadd.f32 %v4326_v2, %v699_v50 }
 0x128   : > { %v822_v1 = vrot.slane %v742_v27, 7 }
 0x129   : > { %v746_v16 = vmax.f32 %v700_v49, 0.0  ;;  %v3661_v49 = vpack.i.bf16 %v4594_v10, %v4654_v33 }
 0x12a   : > { %3627 = vrot.lane.b32.xlu1 %v3626_v14, %s4021_s21  ;;  %3622 = vrot.lane.b32.xlu0 %v3621_v38, %s4021_s21  ;;  %v1092_v14 = vrot.slane %v4813_v40, 2  ;;  %v823_v38 = vrot.slane %v743_v43, 7  ;;  %v744_v43 = vmax.f32 %v690_v46, 0.0  ;;  %v705_v46 = vadd.f32 %v3348_v32, %v4326_v2 }
 0x12b   : > { %v3651_v32 = vpack.i.bf16 %v4749_v60, %v4635_v6 }
 0x12c   : > { %v4831_v51 = vsel %vm783_vm2, %v823_v38, 0.0  ;;  %v4834_v29 = vsel %vm1030_vm4, %v1091_v61, %v1092_v14  ;;  %v4845_v27 = vsel %vm783_vm2, %v822_v1, %v823_v38  ;;  %v745_v61 = vmax.f32 %v695_v48, 0.0 }
 0x12d   : > { %v1099_v56 = vrot.slane %v4831_v51, 2  ;;  %3390 = vmatprep.mubr.msk.f32.mxu0 %vm1731_vm5, %v4834_v29  ;;  %v1097_v28 = vrot.slane %v4845_v27, 2  ;;  %v990_v48 = vrot.slane %v4654_v33, 1  ;;  %v825_v38 = vrot.slane %v744_v43, 7 }
 0x12e   : > { %3632 = vrot.lane.b32.xlu1 %v3631_v45, %s4023_s23  ;;  %3637 = vrot.lane.b32.xlu0 %v3636_v36, %s4023_s23  ;;  %v4842_v36 = vsel %vm1030_vm4, %v1092_v14, %v1094_v0  ;;  %v4848_v45 = vsel %vm783_vm2, 0.0, %v822_v1  ;;  %v993_v0 = vrot.slane %v4648_v59, 1  ;;  %v709_v1 = vpop.f32.mrf.mxu0  ;;  %v3656_v14 = vpack.i.bf16 %v4746_v62, %v4645_v17 }
 0x12f   : > { %3391 = vmatmul.mubr.msk.f32.gmra.mxu0 %vm1731_vm5, %v4842_v36  ;;  %v1096_v53 = vrot.slane %v4848_v45, 2  ;;  %v826_v30 = vrot.slane %v745_v61, 7  ;;  %v4870_v59 = vsel %vm1030_vm4, %v1097_v28, %v1099_v56  ;;  %v710_v43 = vadd.f32 %v4326_v2, %v709_v1 }
 0x130   : > { %v3666_v56 = vpack.i.bf16 %v4607_v34, %v4651_v19  ;;  %v828_v1 = vrot.slane %v746_v16, 7 }
 0x131   : > { %v4863_v50 = vsel %vm1030_vm4, %v1096_v53, %v1097_v28  ;;  %v715_v53 = vadd.f32 %v3351_v25, %v4326_v2  ;;  %v4882_v28 = vsel %vm783_vm2, %v826_v30, 0.0  ;;  %v4891_v2 = vsel %vm783_vm2, %v825_v38, %v826_v30 }
 0x132   : > { %3647 = vrot.lane.b32.xlu1 %v3646_v26, %s4022_s22  ;;  %3642 = vrot.lane.b32.xlu0 %v3641_v39, %s4022_s22  ;;  %v991_v26 = vrot.slane %v4651_v19, 1  ;;  %v747_v39 = vmax.f32 %v705_v46, 0.0  ;;  %v1104_v61 = vrot.slane %v4882_v28, 2  ;;  %v4888_v46 = vsel %vm783_vm2, 0.0, %v825_v38 }
 0x133   : > { %3393 = vmatprep.mubr.msk.f32.mxu0 %vm1731_vm5, %v4863_v50  ;;  %v749_v25 = vmax.f32 %v715_v53, 0.0  ;;  %v1102_v60 = vrot.slane %v4891_v2, 2 }
 0x134   : > { %3394 = vmatmul.mubr.msk.f32.gmra.mxu0 %vm1731_vm5, %v4870_v59  ;;  %v4895_v10 = vsel %vm949_vm3, %v991_v26, %v993_v0  ;;  %v4898_v62 = vsel %vm949_vm3, %v990_v48, %v991_v26  ;;  %v829_v34 = vrot.slane %v747_v39, 7  ;;  %v4911_v48 = vsel %vm783_vm2, 0.0, %v828_v1 }
 0x135   : > { %v832_v30 = vrot.slane %v749_v25, 7  ;;  %v3676_v38 = vpack.i.bf16 %v4622_v41, %v4895_v10  ;;  %v3671_v0 = vpack.i.bf16 %v4625_v42, %v4898_v62  ;;  %v4916_v26 = vsel %vm1030_vm4, %v1102_v60, %v1104_v61 }
 0x136   : > { %3657 = vrot.lane.b32.xlu1 %v3656_v14, %s4021_s21  ;;  %3652 = vrot.lane.b32.xlu0 %v3651_v32, %s4021_s21  ;;  %v748_v14 = vmax.f32 %v710_v43, 0.0  ;;  %v1101_v32 = vrot.slane %v4888_v46, 2  ;;  %v4919_v39 = vsel %vm783_vm2, %v829_v34, 0.0  ;;  %v4922_v43 = vsel %vm783_vm2, %v828_v1, %v829_v34 }
 0x137   : > { %5870 = vst [vmem:[#allocation37_spill] sm:$0xff] %v4922_v43  ;;  %v1107_v25 = vrot.slane %v4922_v43, 2  ;;  %v3686_v1 = vpack.i.bf16 %v4807_v54, %v4693_v4  ;;  %v998_v42 = vrot.slane %v4677_v3, 1  ;;  %v995_v43 = vrot.slane %v4686_v52, 1 }
 0x138   : > { %v831_v53 = vrot.slane %v748_v14, 7  ;;  %v4904_v16 = vsel %vm1030_vm4, %v1101_v32, %v1102_v60  ;;  %v1109_v60 = vrot.slane %v4919_v39, 2  ;;  %v3681_v14 = vpack.i.bf16 %v4823_v21, %v4680_v9 }
 0x139   : > { %3396 = vmatprep.mubr.msk.f32.mxu0 %vm1731_vm5, %v4904_v16  ;;  %v996_v54 = vrot.slane %v4683_v11, 1 }
 0x13a   : > { %3662 = vrot.lane.b32.xlu1 %v3661_v49, %s4023_s23  ;;  %3667 = vrot.lane.b32.xlu0 %v3666_v56, %s4023_s23  ;;  %v916_v49 = vsel %vm783_vm2, %v832_v30, 0.0  ;;  %v1106_v56 = vrot.slane %v4911_v48, 2  ;;  %v4932_v61 = vsel %vm783_vm2, 0.0, %v831_v53 }
 0x13b   : > { %3397 = vmatmul.mubr.msk.f32.gmra.mxu0 %vm1731_vm5, %v4916_v26  ;;  %v1150_v32 = vrot.slane %v4932_v61, 2  ;;  %v1116_v34 = vrot.slane %v916_v49, 1 }
 0x13c   : > { %v4945_v41 = vsel %vm1030_vm4, %v1106_v56, %v1107_v25 }
 0x13d   : > { %5871 = vst [vmem:[#allocation38_spill] sm:$0xff] %v4945_v41  ;;  %3399 = vmatprep.mubr.msk.f32.mxu0 %vm1731_vm5, %v4945_v41 }
 0x13e   : > { %3677 = vrot.lane.b32.xlu1 %v3676_v38, %s4022_s22  ;;  %3672 = vrot.lane.b32.xlu0 %v3671_v0, %s4022_s22  ;;  %v4941_v38 = vsel %vm783_vm2, %v831_v53, %v832_v30  ;;  %v1113_v0 = vrot.slane %v4932_v61, 1  ;;  %v1153_v53 = vrot.slane %v916_v49, 2  ;;  %v4956_v30 = vsel %vm1030_vm4, %v1107_v25, %v1109_v60 }
 0x13f   : > { %v1151_v21 = vrot.slane %v4941_v38, 2  ;;  %v1114_v56 = vrot.slane %v4941_v38, 1  ;;  %3400 = vmatmul.mubr.msk.f32.gmra.mxu0 %vm1731_vm5, %v4956_v30  ;;  %v3691_v49 = vpack.i.bf16 %v4635_v6, %v4686_v52  ;;  %v3696_v60 = vpack.i.bf16 %v4645_v17, %v4683_v11 }
 0x141   : > { %v4962_v3 = vsel %vm1030_vm4, %v1150_v32, %v1151_v21  ;;  %v4975_v25 = vsel %vm949_vm3, %v1113_v0, %v1114_v56  ;;  %v4981_v32 = vsel %vm949_vm3, %v996_v54, %v998_v42  ;;  %v4989_v6 = vsel %vm1030_vm4, %v1151_v21, %v1153_v53 }
 0x142   : > { %3687 = vrot.lane.b32.xlu1 %v3686_v1, %s4021_s21  ;;  %3682 = vrot.lane.b32.xlu0 %v3681_v14, %s4021_s21  ;;  %v4978_v14 = vsel %vm949_vm3, %v1114_v56, %v1116_v34  ;;  %v4984_v1 = vsel %vm949_vm3, %v995_v43, %v996_v54  ;;  %v3706_v17 = vpack.i.bf16 %v4651_v19, %v4981_v32  ;;  %v1003_v43 = vrot.slane %v4724_v7, 1 }
 0x143   : > { %3402 = vmatprep.mubr.msk.f32.mxu0 %vm1731_vm5, %v4962_v3  ;;  %v3701_v42 = vpack.i.bf16 %v4654_v33, %v4984_v1  ;;  %v3716_v54 = vpack.i.bf16 %v4895_v10, %v4718_v37  ;;  %v3711_v21 = vpack.i.bf16 %v4898_v62, %v4709_v63  ;;  %v1000_v34 = vrot.slane %v4733_v15, 1 }
 0x144   : > { %3403 = vmatmul.mubr.msk.f32.gmra.mxu0 %vm1731_vm5, %v4989_v6  ;;  %v1001_v0 = vrot.slane %v4730_v47, 1 }
 0x145   : > { %3405 = vmatprep.mubr.msk.f32.mxu0 %vm1731_vm5, %v4427_v8  ;;  %v3721_v8 = vpack.i.bf16 %v4680_v9, %v4733_v15  ;;  %v3746_v9 = vpack.i.bf16 %v4981_v32, %v4762_v58 }
 0x146   : > { %3692 = vrot.lane.b32.xlu1 %v3691_v49, %s4023_s23  ;;  %3697 = vrot.lane.b32.xlu0 %v3696_v60, %s4023_s23  ;;  %v5017_v53 = vsel %vm949_vm3, %v1001_v0, %v1003_v43  ;;  %v5020_v56 = vsel %vm949_vm3, %v1000_v34, %v1001_v0  ;;  %v1008_v60 = vrot.slane %v4769_v31, 1 }
 0x147   : > { %5872 = vst [vmem:[#allocation39_spill] sm:$0xff] %v5017_v53  ;;  %v3736_v7 = vpack.i.bf16 %v4683_v11, %v5017_v53  ;;  %v3731_v49 = vpack.i.bf16 %v4686_v52, %v5020_v56  ;;  %v3781_v11 = vpack.i.bf16 %v4752_v35, %v4816_v57 }
 0x148   : > { %3406 = vmatmul.mubr.msk.f32.gmra.mxu0 %vm1731_vm5, %v4448_v20  ;;  %v3726_v20 = vpack.i.bf16 %v4693_v4, %v4730_v47  ;;  %v3741_v4 = vpack.i.bf16 %v4984_v1, %v4752_v35 }
 0x14a   : > { %3707 = vrot.lane.b32.xlu1 %v3706_v17, %s4022_s22  ;;  %3702 = vrot.lane.b32.xlu0 %v3701_v42, %s4022_s22  ;;  %v1005_v17 = vrot.slane %v4759_v18, 1  ;;  %v1006_v42 = vrot.slane %v4776_v23, 1 }
 0x14c   : > { %v5044_v43 = vsel %vm949_vm3, %v1006_v42, %v1008_v60  ;;  %v5047_v34 = vsel %vm949_vm3, %v1005_v17, %v1006_v42 }
 0x14e   : > { %3717 = vrot.lane.b32.xlu1 %v3716_v54, %s4021_s21  ;;  %3712 = vrot.lane.b32.xlu0 %v3711_v21, %s4021_s21  ;;  %v3751_v54 = vpack.i.bf16 %v4709_v63, %v4759_v18  ;;  %v3756_v21 = vpack.i.bf16 %v4718_v37, %v4776_v23  ;;  %v3761_v63 = vpack.i.bf16 %v4733_v15, %v5047_v34 }
 0x152   : > { %3722 = vrot.lane.b32.xlu1 %v3721_v8, %s4023_s23  ;;  %3727 = vrot.lane.b32.xlu0 %v3726_v20, %s4023_s23  ;;  %v3766_v8 = vpack.i.bf16 %v4730_v47, %v5044_v43 }
 0x156   : > { %3737 = vrot.lane.b32.xlu1 %v3736_v7, %s4022_s22  ;;  %3732 = vrot.lane.b32.xlu0 %v3731_v49, %s4022_s22  ;;  %v1013_v7 = vrot.slane %v4810_v22, 1  ;;  %v1010_v49 = vrot.slane %v4816_v57, 1 }
 0x15a   : > { %3747 = vrot.lane.b32.xlu1 %v3746_v9, %s4021_s21  ;;  %3742 = vrot.lane.b32.xlu0 %v3741_v4, %s4021_s21  ;;  %v3776_v9 = vpack.i.bf16 %v5017_v53, %v4796_v44  ;;  %v3771_v4 = vpack.i.bf16 %v5020_v56, %v4789_v12 }
 0x15e   : > { %3752 = vrot.lane.b32.xlu1 %v3751_v54, %s4023_s23  ;;  %3757 = vrot.lane.b32.xlu0 %v3756_v21, %s4023_s23  ;;  %v1011_v54 = vrot.slane %v4813_v40, 1 }
 0x160   : > { %v3478_v31 = vpop.permute.xlu1 %3477  ;;  %v3473_v0 = vpop.permute.xlu0 %3472 }
 0x161   : > { %v3475_v20 = vunpack.i.h.bf16 %v3473_v0  ;;  %v3474_v37 = vunpack.i.l.bf16 %v3473_v0  ;;  %v3480_v60 = vunpack.i.h.bf16 %v3478_v31  ;;  %v3479_v22 = vunpack.i.l.bf16 %v3478_v31 }
 0x162   : > { %3767 = vrot.lane.b32.xlu1 %v3766_v8, %s4022_s22  ;;  %3762 = vrot.lane.b32.xlu0 %v3761_v63, %s4022_s22 }
 0x163   : > { %v1830_v41 = vsel %vm1731_vm5, %v4492_v55, %v3474_v37  ;;  %v1732_v47 = vsel %vm1731_vm5, %v4351_v13, %v3475_v20  ;;  %v5079_v20 = vsel %vm949_vm3, %v1011_v54, %v1013_v7 }
 0x164   : > { %v3493_v17 = vpop.permute.xlu1 %3492  ;;  %v3483_v42 = vpop.permute.xlu0 %3482 }
 0x165   : > { %v3495_v21 = vunpack.i.h.bf16 %v3493_v17  ;;  %v3494_v0 = vunpack.i.l.bf16 %v3493_v17  ;;  %v3485_v8 = vunpack.i.h.bf16 %v3483_v42  ;;  %v3484_v63 = vunpack.i.l.bf16 %v3483_v42 }
 0x166   : > { %3777 = vrot.lane.b32.xlu1 %v3776_v9, %s4021_s21  ;;  %3772 = vrot.lane.b32.xlu0 %v3771_v4, %s4021_s21  ;;  %v3786_v17 = vpack.i.bf16 %v4762_v58, %v4813_v40  ;;  %v4024_v42 = vmov 0  }
 0x167   : > { %v1862_v15 = vsel %vm1764_vm6, %v1830_v41, %v3484_v63  ;;  %v1765_v31 = vsel %vm1764_vm6, %v1732_v47, %v3485_v8  ;;  %3951 = vset.pattern.permute.xlu0 %v4024_v42  ;;  %v5082_v41 = vsel %vm949_vm3, %v1010_v49, %v1011_v54  ;;  %v1831_v47 = vsel %vm1731_vm5, %v4489_v24, %v3479_v22 }
 0x168   : > { %v3498_v9 = vpop.permute.xlu1 %3497  ;;  %v3488_v4 = vpop.permute.xlu0 %3487  ;;  %v1894_v53 = vsel %vm1797_vm7, %v1862_v15, %v3494_v0  ;;  %v1798_v55 = vsel %vm1797_vm7, %v1765_v31, %v3495_v21  ;;  %v1733_v15 = vsel %vm1731_vm5, %v4336_v5, %v3480_v60  ;;  %v1018_v60 = vrot.slane %v4831_v51, 1 }
 0x169   : > { %v3500_v35 = vunpack.i.h.bf16 %v3498_v9  ;;  %v3499_v37 = vunpack.i.l.bf16 %v3498_v9  ;;  %v3490_v63 = vunpack.i.h.bf16 %v3488_v4  ;;  %v3489_v58 = vunpack.i.l.bf16 %v3488_v4  ;;  %2097 = vmatprep.mubr.f32.mxu1 %v1894_v53 }
 0x16a   : > { %3782 = vrot.lane.b32.xlu1 %v3781_v11, %s4023_s23  ;;  %3787 = vrot.lane.b32.xlu0 %v3786_v17, %s4023_s23  ;;  %v3796_v11 = vpack.i.bf16 %v4776_v23, %v5079_v20  ;;  %v3791_v53 = vpack.i.bf16 %v4759_v18, %v5082_v41  ;;  %v1015_v8 = vrot.slane %v4848_v45, 1  ;;  %v3806_v42 = vpack.i.bf16 %v5044_v43, %v4842_v36 }
 0x16b   : > { %2098 = vmatmul.mubr.f32.vlgmr.msra.gmra.mxu1 %v1798_v55  ;;  %v1863_v7 = vsel %vm1764_vm6, %v1831_v47, %v3489_v58  ;;  %v1766_v49 = vsel %vm1764_vm6, %v1733_v15, %v3490_v63  ;;  %v3801_v9 = vpack.i.bf16 %v5047_v34, %v4834_v29  ;;  %v1016_v4 = vrot.slane %v4845_v27, 1 }
 0x16c   : > { %v3508_v54 = vpop.permute.xlu1 %3507  ;;  %v3503_v21 = vpop.permute.xlu0 %3502  ;;  %v1895_v0 = vsel %vm1797_vm7, %v1863_v7, %v3499_v37  ;;  %v1799_v24 = vsel %vm1797_vm7, %v1766_v49, %v3500_v35  ;;  %v3811_v51 = vpack.i.bf16 %v4789_v12, %v4848_v45  ;;  %v3816_v63 = vpack.i.bf16 %v4796_v44, %v4845_v27  ;;  %v5873_v7 = vld [vmem:[#allocation11_spill] sm:$0xff] }
 0x16d   : > { %2102 = vmatprep.mubr.f32.mxu1 %v1895_v0  ;;  %v3504_v22 = vunpack.i.l.bf16 %v3503_v21  ;;  %v3505_v55 = vunpack.i.h.bf16 %v3503_v21  ;;  %v3509_v58 = vunpack.i.l.bf16 %v3508_v54  ;;  %v5116_v21 = vsel %vm949_vm3, %v1016_v4, %v1018_v60 }
 0x16e   : > { %3797 = vrot.lane.b32.xlu1 %v3796_v11, %s4022_s22  ;;  %3792 = vrot.lane.b32.xlu0 %v3791_v53, %s4022_s22  ;;  %v5119_v0 = vsel %vm949_vm3, %v1015_v8, %v1016_v4 }
 0x16f   : > { %2103 = vmatmul.mubr.f32.gmra.mxu1 %v1799_v24  ;;  %v1832_v49 = vsel %vm1731_vm5, %v5873_v7, %v3504_v22 }
 0x170   : > { %v3513_v17 = vpop.permute.xlu1 %3512  ;;  %v3518_v31 = vpop.permute.xlu0 %3517 }
 0x171   : > { %v3515_v35 = vunpack.i.h.bf16 %v3513_v17  ;;  %v3514_v37 = vunpack.i.l.bf16 %v3513_v17  ;;  %v3519_v11 = vunpack.i.l.bf16 %v3518_v31  ;;  %v5874_v17 = vld [vmem:[#allocation6_spill] sm:$0xff] }
 0x172   : > { %3807 = vrot.lane.b32.xlu1 %v3806_v42, %s4021_s21  ;;  %3802 = vrot.lane.b32.xlu0 %v3801_v9, %s4021_s21  ;;  %v1734_v12 = vsel %vm1731_vm5, %v5874_v17, %v3505_v55  ;;  %v3510_v42 = vunpack.i.h.bf16 %v3508_v54  ;;  %v3520_v9 = vunpack.i.h.bf16 %v3518_v31  ;;  %v3826_v54 = vpack.i.bf16 %v4813_v40, %v5116_v21 }
 0x173   : > { %v1864_v22 = vsel %vm1764_vm6, %v1832_v49, %v3514_v37  ;;  %v1767_v60 = vsel %vm1764_vm6, %v1734_v12, %v3515_v35  ;;  %v3821_v55 = vpack.i.bf16 %v4816_v57, %v5119_v0  ;;  %v1023_v49 = vrot.slane %v4882_v28, 1 }
 0x174   : > { %v3528_v47 = vpop.permute.xlu1 %3527  ;;  %v3523_v15 = vpop.permute.xlu0 %3522 }
 0x175   : > { %v3525_v53 = vunpack.i.h.bf16 %v3523_v15  ;;  %v3524_v24 = vunpack.i.l.bf16 %v3523_v15  ;;  %v3529_v44 = vunpack.i.l.bf16 %v3528_v47  ;;  %v3530_v7 = vunpack.i.h.bf16 %v3528_v47 }
 0x176   : > { %3812 = vrot.lane.b32.xlu1 %v3811_v51, %s4023_s23  ;;  %3817 = vrot.lane.b32.xlu0 %v3816_v63, %s4023_s23  ;;  %v5875_v51 = vld [vmem:[#allocation14_spill] sm:$0xff]  ;;  %v5876_v63 = vld [vmem:[#allocation5_spill] sm:$0xff] }
 0x177   : > { %v1896_v8 = vsel %vm1797_vm7, %v1864_v22, %v3524_v24  ;;  %v1800_v4 = vsel %vm1797_vm7, %v1767_v60, %v3525_v53  ;;  %v1833_v37 = vsel %vm1731_vm5, %v5875_v51, %v3509_v58  ;;  %v1735_v47 = vsel %vm1731_vm5, %v5876_v63, %v3510_v42  ;;  %v5877_v51 = vld [vmem:[#allocation20_spill] sm:$0xff] }
 0x178   : > { %v5129_v15 = vpop.permute.xlu1 %3537  ;;  %v3533_v23 = vpop.permute.xlu0 %3532  ;;  %2107 = vmatprep.mubr.f32.mxu1 %v1896_v8  ;;  %v1865_v31 = vsel %vm1764_vm6, %v1833_v37, %v3519_v11  ;;  %v1020_v53 = vrot.slane %v4888_v46, 1  ;;  %v1768_v24 = vsel %vm1764_vm6, %v1735_v47, %v3520_v9  ;;  %v3836_v58 = vpack.i.bf16 %v5079_v20, %v4870_v59 }
 0x179   : > { %2108 = vmatmul.mubr.f32.gmra.mxu1 %v1800_v4  ;;  %v1897_v35 = vsel %vm1797_vm7, %v1865_v31, %v3529_v44  ;;  %v3534_v11 = vunpack.i.l.bf16 %v3533_v23  ;;  %v1801_v22 = vsel %vm1797_vm7, %v1768_v24, %v3530_v7  ;;  %v3831_v44 = vpack.i.bf16 %v5082_v41, %v4863_v50 }
 0x17a   : > { %3827 = vrot.lane.b32.xlu1 %v3826_v54, %s4022_s22  ;;  %3822 = vrot.lane.b32.xlu0 %v3821_v55, %s4022_s22  ;;  %v1021_v42 = vrot.slane %v4891_v2, 1  ;;  %v3535_v60 = vunpack.i.h.bf16 %v3533_v23  ;;  %v3841_v9 = vpack.i.bf16 %v4834_v29, %v4888_v46  ;;  %v3846_v4 = vpack.i.bf16 %v4842_v36, %v4891_v2  ;;  %v5878_v29 = vld [vmem:[#allocation10_spill] sm:$0xff] }
 0x17b   : > { %2112 = vmatprep.mubr.f32.mxu1 %v1897_v35  ;;  %v3539_v7 = vunpack.i.l.bf16 %v5129_v15  ;;  %v1834_v23 = vsel %vm1731_vm5, %v5877_v51, %v3534_v11  ;;  %v3540_v36 = vunpack.i.h.bf16 %v5129_v15  ;;  %v1028_v51 = vrot.slane %v4919_v39, 1 }
 0x17c   : > { %v3543_v17 = vpop.permute.xlu1 %3542  ;;  %v3548_v12 = vpop.permute.xlu0 %3547  ;;  %v5162_v37 = vsel %vm949_vm3, %v1021_v42, %v1023_v49  ;;  %v5165_v31 = vsel %vm949_vm3, %v1020_v53, %v1021_v42  ;;  %v1736_v24 = vsel %vm1731_vm5, %v5878_v29, %v3535_v60 }
 0x17d   : > { %2113 = vmatmul.mubr.f32.gmra.mxu1 %v1801_v22  ;;  %v3545_v28 = vunpack.i.h.bf16 %v3543_v17  ;;  %v3544_v8 = vunpack.i.l.bf16 %v3543_v17  ;;  %v3549_v35 = vunpack.i.l.bf16 %v3548_v12  ;;  %v3550_v17 = vunpack.i.h.bf16 %v3548_v12 }
 0x17e   : > { %3837 = vrot.lane.b32.xlu1 %v3836_v58, %s4021_s21  ;;  %3832 = vrot.lane.b32.xlu0 %v3831_v44, %s4021_s21  ;;  %v3856_v15 = vpack.i.bf16 %v4845_v27, %v5162_v37 }
 0x17f   : > { %v1866_v11 = vsel %vm1764_vm6, %v1834_v23, %v3544_v8  ;;  %v1769_v49 = vsel %vm1764_vm6, %v1736_v24, %v3545_v28  ;;  %v1025_v23 = vrot.slane %v4911_v48, 1 }
 0x180   : > { %v3558_v54 = vpop.permute.xlu1 %3557  ;;  %v3553_v55 = vpop.permute.xlu0 %3552 }
 0x181   : > { %v3555_v63 = vunpack.i.h.bf16 %v3553_v55  ;;  %v3554_v47 = vunpack.i.l.bf16 %v3553_v55  ;;  %v3559_v58 = vunpack.i.l.bf16 %v3558_v54  ;;  %v3560_v44 = vunpack.i.h.bf16 %v3558_v54  ;;  %v5880_v54 = vld [vmem:[#allocation9_spill] sm:$0xff] }
 0x182   : > { %3842 = vrot.lane.b32.xlu1 %v3841_v9, %s4023_s23  ;;  %3847 = vrot.lane.b32.xlu0 %v3846_v4, %s4023_s23  ;;  %v3851_v9 = vpack.i.bf16 %v4848_v45, %v5165_v31  ;;  %v5879_v4 = vld [vmem:[#allocation19_spill] sm:$0xff]  ;;  %v1737_v55 = vsel %vm1731_vm5, %v5880_v54, %v3540_v36 }
 0x183   : > { %v1898_v53 = vsel %vm1797_vm7, %v1866_v11, %v3554_v47  ;;  %v1802_v22 = vsel %vm1797_vm7, %v1769_v49, %v3555_v63  ;;  %v1835_v8 = vsel %vm1731_vm5, %v5879_v4, %v3539_v7  ;;  %v1770_v63 = vsel %vm1764_vm6, %v1737_v55, %v3550_v17  ;;  %v5881_v11 = vld [vmem:[#allocation37_spill] sm:$0xff]  ;;  %v5882_v4 = vld [vmem:[#allocation24_spill] sm:$0xff] }
 0x184   : > { %v5176_v42 = vpop.permute.xlu1 %3567  ;;  %v3563_v60 = vpop.permute.xlu0 %3562  ;;  %2117 = vmatprep.mubr.f32.mxu1 %v1898_v53  ;;  %v1867_v12 = vsel %vm1764_vm6, %v1835_v8, %v3549_v35  ;;  %v3866_v7 = vpack.i.bf16 %v5116_v21, %v4916_v26  ;;  %v1803_v24 = vsel %vm1797_vm7, %v1770_v63, %v3560_v44  ;;  %v1026_v36 = vrot.slane %v5881_v11, 1 }
 0x185   : > { %2118 = vmatmul.mubr.f32.gmra.mxu1 %v1802_v22  ;;  %v1899_v28 = vsel %vm1797_vm7, %v1867_v12, %v3559_v58  ;;  %v3564_v35 = vunpack.i.l.bf16 %v3563_v60  ;;  %v3861_v58 = vpack.i.bf16 %v5119_v0, %v4904_v16  ;;  %v3565_v49 = vunpack.i.h.bf16 %v3563_v60 }
 0x186   : > { %3857 = vrot.lane.b32.xlu1 %v3856_v15, %s4022_s22  ;;  %3852 = vrot.lane.b32.xlu0 %v3851_v9, %s4022_s22  ;;  %v3871_v17 = vpack.i.bf16 %v4863_v50, %v4911_v48  ;;  %v3876_v22 = vpack.i.bf16 %v4870_v59, %v5881_v11  ;;  %v3569_v44 = vunpack.i.l.bf16 %v5176_v42  ;;  %v5209_v8 = vsel %vm949_vm3, %v1026_v36, %v1028_v51  ;;  %v5883_v50 = vld [vmem:[#allocation13_spill] sm:$0xff] }
 0x187   : > { %2122 = vmatprep.mubr.f32.mxu1 %v1899_v28  ;;  %v1836_v60 = vsel %vm1731_vm5, %v5882_v4, %v3564_v35  ;;  %v5212_v12 = vsel %vm949_vm3, %v1025_v23, %v1026_v36  ;;  %v1738_v63 = vsel %vm1731_vm5, %v5883_v50, %v3565_v49  ;;  %v3570_v59 = vunpack.i.h.bf16 %v5176_v42  ;;  %v5886_v50 = vld [vmem:[#allocation38_spill] sm:$0xff] }
 0x188   : > { %v3573_v47 = vpop.permute.xlu1 %3572  ;;  %v3578_v29 = vpop.permute.xlu0 %3577  ;;  %v3886_v42 = vpack.i.bf16 %v4891_v2, %v5209_v8  ;;  %v3881_v49 = vpack.i.bf16 %v4888_v46, %v5212_v12 }
 0x189   : > { %2123 = vmatmul.mubr.f32.gmra.mxu1 %v1803_v24  ;;  %v3575_v39 = vunpack.i.h.bf16 %v3573_v47  ;;  %v3574_v53 = vunpack.i.l.bf16 %v3573_v47  ;;  %v3579_v28 = vunpack.i.l.bf16 %v3578_v29  ;;  %v3580_v47 = vunpack.i.h.bf16 %v3578_v29 }
 0x18a   : > { %3867 = vrot.lane.b32.xlu1 %v3866_v7, %s4021_s21  ;;  %3862 = vrot.lane.b32.xlu0 %v3861_v58, %s4021_s21 }
 0x18b   : > { %v1868_v35 = vsel %vm1764_vm6, %v1836_v60, %v3574_v53  ;;  %v1771_v51 = vsel %vm1764_vm6, %v1738_v63, %v3575_v39  ;;  %v3891_v63 = vpack.i.bf16 %v5165_v31, %v5886_v50 }
 0x18c   : > { %v3588_v15 = vpop.permute.xlu1 %3587  ;;  %v3583_v9 = vpop.permute.xlu0 %3582 }
 0x18d   : > { %v3585_v54 = vunpack.i.h.bf16 %v3583_v9  ;;  %v3584_v55 = vunpack.i.l.bf16 %v3583_v9  ;;  %v3589_v7 = vunpack.i.l.bf16 %v3588_v15  ;;  %v3590_v58 = vunpack.i.h.bf16 %v3588_v15 }
 0x18e   : > { %3872 = vrot.lane.b32.xlu1 %v3871_v17, %s4023_s23  ;;  %3877 = vrot.lane.b32.xlu0 %v3876_v22, %s4023_s23  ;;  %v5884_v17 = vld [vmem:[#allocation23_spill] sm:$0xff]  ;;  %v5885_v22 = vld [vmem:[#allocation12_spill] sm:$0xff] }
 0x18f   : > { %v1900_v23 = vsel %vm1797_vm7, %v1868_v35, %v3584_v55  ;;  %v1804_v24 = vsel %vm1797_vm7, %v1771_v51, %v3585_v54  ;;  %v1837_v53 = vsel %vm1731_vm5, %v5884_v17, %v3569_v44  ;;  %v1739_v15 = vsel %vm1731_vm5, %v5885_v22, %v3570_v59 }
 0x190   : > { %v3598_v36 = vpop.permute.xlu1 %3597  ;;  %v3593_v9 = vpop.permute.xlu0 %3592  ;;  %2127 = vmatprep.mubr.f32.mxu1 %v1900_v23  ;;  %v1869_v29 = vsel %vm1764_vm6, %v1837_v53, %v3579_v28  ;;  %v1772_v4 = vsel %vm1764_vm6, %v1739_v15, %v3580_v47  ;;  %v3896_v28 = vpack.i.bf16 %v5162_v37, %v4956_v30  ;;  %v5888_v53 = vld [vmem:[#allocation16_spill] sm:$0xff]  ;;  %v5889_v22 = vpack.i.bf16 %v4904_v16, %v4932_v61 }
 0x191   : > { %2128 = vmatmul.mubr.f32.gmra.mxu1 %v1804_v24  ;;  %v1901_v39 = vsel %vm1797_vm7, %v1869_v29, %v3589_v7  ;;  %v3594_v60 = vunpack.i.l.bf16 %v3593_v9  ;;  %v1805_v44 = vsel %vm1797_vm7, %v1772_v4, %v3590_v58  ;;  %v3595_v35 = vunpack.i.h.bf16 %v3593_v9  ;;  %v5887_v24 = vld [vmem:[#allocation28_spill] sm:$0xff] }
 0x192   : > { %3887 = vrot.lane.b32.xlu1 %v3886_v42, %s4022_s22  ;;  %3882 = vrot.lane.b32.xlu0 %v3881_v49, %s4022_s22  ;;  %v3599_v59 = vunpack.i.l.bf16 %v3598_v36  ;;  %v3600_v9 = vunpack.i.h.bf16 %v3598_v36  ;;  %v5890_v15 = vpack.i.bf16 %v4916_v26, %v4941_v38  ;;  %v3906_v16 = vpack.i.bf16 %v5886_v50, %v4351_v13 }
 0x193   : > { %2132 = vmatprep.mubr.f32.mxu1 %v1901_v39  ;;  %v1838_v58 = vsel %vm1731_vm5, %v5887_v24, %v3594_v60  ;;  %v1740_v29 = vsel %vm1731_vm5, %v5888_v53, %v3595_v35  ;;  %v3916_v26 = vpack.i.bf16 %v4911_v48, %v4975_v25 }
 0x194   : > { %v3603_v54 = vpop.permute.xlu1 %3602  ;;  %v3608_v55 = vpop.permute.xlu0 %3607 }
 0x195   : > { %2133 = vmatmul.mubr.f32.gmra.mxu1 %v1805_v44  ;;  %v3605_v7 = vunpack.i.h.bf16 %v3603_v54  ;;  %v3604_v51 = vunpack.i.l.bf16 %v3603_v54  ;;  %v3609_v42 = vunpack.i.l.bf16 %v3608_v55  ;;  %v3610_v54 = vunpack.i.h.bf16 %v3608_v55 }
 0x196   : > { %3897 = vrot.lane.b32.xlu1 %v3896_v28, %s4021_s21  ;;  %3892 = vrot.lane.b32.xlu0 %v3891_v63, %s4021_s21 }
 0x197   : > { %v1870_v4 = vsel %vm1764_vm6, %v1838_v58, %v3604_v51  ;;  %v1773_v60 = vsel %vm1764_vm6, %v1740_v29, %v3605_v7 }
 0x198   : > { %v3618_v47 = vpop.permute.xlu1 %3617  ;;  %v3613_v23 = vpop.permute.xlu0 %3612 }
 0x199   : > { %v3615_v49 = vunpack.i.h.bf16 %v3613_v23  ;;  %v3614_v17 = vunpack.i.l.bf16 %v3613_v23  ;;  %v3619_v39 = vunpack.i.l.bf16 %v3618_v47  ;;  %v3620_v28 = vunpack.i.h.bf16 %v3618_v47  ;;  %v5891_v23 = vld [vmem:[#allocation27_spill] sm:$0xff] }
 0x19a   : > { %3902 = vrot.lane.b32.xlu1 %v5889_v22, %s4023_s23  ;;  %3912 = vrot.lane.b32.xlu0 %v5890_v15, %s4023_s23  ;;  %v1839_v51 = vsel %vm1731_vm5, %v5891_v23, %v3599_v59  ;;  %v5892_v47 = vld [vmem:[#allocation15_spill] sm:$0xff] }
 0x19b   : > { %v1902_v44 = vsel %vm1797_vm7, %v1870_v4, %v3614_v17  ;;  %v1806_v36 = vsel %vm1797_vm7, %v1773_v60, %v3615_v49  ;;  %v1871_v55 = vsel %vm1764_vm6, %v1839_v51, %v3609_v42  ;;  %v1741_v24 = vsel %vm1731_vm5, %v5892_v47, %v3600_v9  ;;  %v5893_v60 = vld [vmem:[#allocation8_spill] sm:$0xff] }
 0x19c   : > { %v3628_v63 = vpop.permute.xlu1 %3627  ;;  %v3623_v35 = vpop.permute.xlu0 %3622  ;;  %2137 = vmatprep.mubr.f32.mxu1 %v1902_v44  ;;  %v1903_v7 = vsel %vm1797_vm7, %v1871_v55, %v3619_v39  ;;  %v1774_v13 = vsel %vm1764_vm6, %v1741_v24, %v3610_v54  ;;  %v3921_v42 = vpack.i.bf16 %v5881_v11, %v4978_v14  ;;  %v3926_v17 = vpack.i.bf16 %v5212_v12, %v4962_v3  ;;  %v5894_v44 = vld [vmem:[#allocation33_spill] sm:$0xff] }
 0x19d   : > { %2138 = vmatmul.mubr.f32.gmra.mxu1 %v1806_v36  ;;  %v3624_v50 = vunpack.i.l.bf16 %v3623_v35  ;;  %v1807_v59 = vsel %vm1797_vm7, %v1774_v13, %v3620_v28  ;;  %v3625_v53 = vunpack.i.h.bf16 %v3623_v35  ;;  %v3629_v9 = vunpack.i.l.bf16 %v3628_v63 }
 0x19e   : > { %3907 = vrot.lane.b32.xlu1 %v3906_v16, %s4023_s23  ;;  %3917 = vrot.lane.b32.xlu0 %v3916_v26, %s4022_s22  ;;  %v3941_v4 = vpack.i.bf16 %v5209_v8, %v4989_v6  ;;  %v3931_v54 = vpack.i.bf16 %v4932_v61, %v5893_v60  ;;  %v5895_v16 = vld [vmem:[#allocation18_spill] sm:$0xff]  ;;  %v3630_v23 = vunpack.i.h.bf16 %v3628_v63 }
 0x19f   : > { %2142 = vmatprep.mubr.f32.mxu1 %v1903_v7  ;;  %v1840_v3 = vsel %vm1731_vm5, %v5894_v44, %v3624_v50  ;;  %v1742_v26 = vsel %vm1731_vm5, %v5895_v16, %v3625_v53 }
 0x1a0   : > { %v3633_v58 = vpop.permute.xlu1 %3632  ;;  %v3638_v49 = vpop.permute.xlu0 %3637 }
 0x1a1   : > { %2143 = vmatmul.mubr.f32.gmra.mxu1 %v1807_v59  ;;  %v3635_v29 = vunpack.i.h.bf16 %v3633_v58  ;;  %v3634_v39 = vunpack.i.l.bf16 %v3633_v58  ;;  %v3639_v36 = vunpack.i.l.bf16 %v3638_v49  ;;  %v3640_v55 = vunpack.i.h.bf16 %v3638_v49  ;;  %v5896_v58 = vld [vmem:[#allocation7_spill] sm:$0xff] }
 0x1a2   : > { %3922 = vrot.lane.b32.xlu1 %v3921_v42, %s4022_s22  ;;  %3927 = vrot.lane.b32.xlu0 %v3926_v17, %s4021_s21  ;;  %v3946_v63 = vpack.i.bf16 %v4941_v38, %v5896_v58  ;;  %v3936_v59 = vpack.i.bf16 %v4956_v30, %v4336_v5  ;;  %v5897_v42 = vld [vmem:[#allocation32_spill] sm:$0xff]  ;;  %v5898_v38 = vld [vmem:[#allocation17_spill] sm:$0xff]  ;;  %v2515_v30 = vld [vmem:[%s347_s26] sm:$0xff] }
 0x1a3   : > { %v1872_v6 = vsel %vm1764_vm6, %v1840_v3, %v3634_v39  ;;  %v1775_v61 = vsel %vm1764_vm6, %v1742_v26, %v3635_v29  ;;  %v1841_v17 = vsel %vm1731_vm5, %v5897_v42, %v3629_v9  ;;  %v1743_v29 = vsel %vm1731_vm5, %v5898_v38, %v3630_v23  ;;  %v5902_v38 = vld [vmem:[#allocation21_spill] sm:$0xff] }
 0x1a4   : > { %v3648_v22 = vpop.permute.xlu1 %3647  ;;  %v3643_v15 = vpop.permute.xlu0 %3642  ;;  %v1873_v49 = vsel %vm1764_vm6, %v1841_v17, %v3639_v36  ;;  %v1776_v5 = vsel %vm1764_vm6, %v1743_v29, %v3640_v55 }
 0x1a5   : > { %v3645_v28 = vunpack.i.h.bf16 %v3643_v15  ;;  %v3644_v35 = vunpack.i.l.bf16 %v3643_v15  ;;  %v3649_v51 = vunpack.i.l.bf16 %v3648_v22  ;;  %v3650_v24 = vunpack.i.h.bf16 %v3648_v22 }
 0x1a6   : > { %3942 = vrot.lane.b32.xlu1 %v3941_v4, %s4021_s21  ;;  %3932 = vrot.lane.b32.xlu0 %v3931_v54, %s4022_s22 }
 0x1a7   : > { %v1904_v7 = vsel %vm1797_vm7, %v1872_v6, %v3644_v35  ;;  %v1808_v47 = vsel %vm1797_vm7, %v1775_v61, %v3645_v28  ;;  %v1905_v53 = vsel %vm1797_vm7, %v1873_v49, %v3649_v51  ;;  %v1809_v15 = vsel %vm1797_vm7, %v1776_v5, %v3650_v24  ;;  %v5899_v35 = vld [vmem:[#allocation36_spill] sm:$0xff]  ;;  %v5900_v6 = vld [vmem:[#allocation22_spill] sm:$0xff] }
 0x1a8   : > { %v3658_v13 = vpop.permute.xlu1 %3657  ;;  %v3653_v50 = vpop.permute.xlu0 %3652  ;;  %2147 = vmatprep.mubr.f32.mxu1 %v1904_v7 }
 0x1a9   : > { %2148 = vmatmul.mubr.f32.gmra.mxu1 %v1808_v47  ;;  %v3654_v39 = vunpack.i.l.bf16 %v3653_v50  ;;  %v3655_v4 = vunpack.i.h.bf16 %v3653_v50  ;;  %v3659_v44 = vunpack.i.l.bf16 %v3658_v13  ;;  %v3660_v55 = vunpack.i.h.bf16 %v3658_v13 }
 0x1aa   : > { %3947 = vrot.lane.b32.xlu1 %v3946_v63, %s4022_s22  ;;  %3937 = vrot.lane.b32.xlu0 %v3936_v59, %s4023_s23  ;;  %v5901_v63 = vld [vmem:[#allocation35_spill] sm:$0xff]  ;;  %s3140_s22 = sshll.u32 %s4098_s13, 7  ;;  %s338_s23 = scalar_lea.vmem [#allocation2], %s3031_s16 }
 0x1ab   : > { %2152 = vmatprep.mubr.f32.mxu1 %v1905_v53  ;;  %v1842_v16 = vsel %vm1731_vm5, %v5899_v35, %v3654_v39  ;;  %v1744_v61 = vsel %vm1731_vm5, %v5900_v6, %v3655_v4  ;;  %v1843_v59 = vsel %vm1731_vm5, %v5901_v63, %v3659_v44  ;;  %v1745_v29 = vsel %vm1731_vm5, %v5902_v38, %v3660_v55  ;;  %s2956_s24 = sshll.u32 %s338_s23, 4  ;;  %s5750_s26 = scalar_lea.hbm %s5795_s9, %s3140_s22  ;;  %s2957_s24 = int_to_ptr.vmem [resolvable:$true] %s2956_s24 }
 0x1ac   : > { %v3663_v9 = vpop.permute.xlu1 %3662  ;;  %v3668_v22 = vpop.permute.xlu0 %3667  ;;  %s3958_s29 = scalar_lea.vmem %s2957_s24, 128  ;;  %s4026_s13 = smov [#allocation2]  }
 0x1ad   : > { %2153 = vmatmul.mubr.f32.gmra.mxu1 %v1809_v15  ;;  %v3665_v60 = vunpack.i.h.bf16 %v3663_v9  ;;  %v3664_v54 = vunpack.i.l.bf16 %v3663_v9  ;;  %v3669_v3 = vunpack.i.l.bf16 %v3668_v22  ;;  %v3670_v24 = vunpack.i.h.bf16 %v3668_v22  ;;  %p3959_p11 = scmp.ne.s32.totalorder %s2957_s24, %s3958_s29  ;;  %s3962_s16 = sshll.u32 %s4026_s13, 4  ;;  %s3963_s16 = int_to_ptr.vmem [resolvable:$false] %s3962_s16 }
 0x1ae   : > { %2519 = vperm.xlu0 %3951, %v2515_v30   ;;  %s3964_s17 = scalar_lea.vmem %s3963_s16, 256  ;;  %p3965_p0 = scmp.lt.s32.totalorder %s2957_s24, %s3963_s16 }
 0x1af   : > { %v1874_v7 = vsel %vm1764_vm6, %v1842_v16, %v3664_v54  ;;  %v1777_v47 = vsel %vm1764_vm6, %v1744_v61, %v3665_v60  ;;  %v1875_v53 = vsel %vm1764_vm6, %v1843_v59, %v3669_v3  ;;  %v1778_v5 = vsel %vm1764_vm6, %v1745_v29, %v3670_v24  ;;  %p3960_p12 = pnand %p3959_p11, %p4115_p5  ;;  %p3966_p1 = scmp.lt.s32.totalorder %s3964_s17, %s3958_s29 }
 0x1b0   : > { %v3678_v36 = vpop.permute.xlu1 %3677  ;;  %v3673_v28 = vpop.permute.xlu0 %3672 }
 0x1b1   : > { %v3679_v26 = vunpack.i.l.bf16 %v3678_v36  ;;  %v3675_v23 = vunpack.i.h.bf16 %v3673_v28  ;;  %v3674_v51 = vunpack.i.l.bf16 %v3673_v28  ;;  %v3680_v42 = vunpack.i.h.bf16 %v3678_v36  ;;  %p3961_p13 = pneg %p3960_p12  ;;  %p3967_p2 = por %p3966_p1, %p3965_p0 }
 0x1b3   : > { %v1906_v50 = vsel %vm1797_vm7, %v1874_v7, %v3674_v51  ;;  %v1810_v58 = vsel %vm1797_vm7, %v1777_v47, %v3675_v23  ;;  %v1907_v13 = vsel %vm1797_vm7, %v1875_v53, %v3679_v26  ;;  %v1811_v22 = vsel %vm1797_vm7, %v1778_v5, %v3680_v42  ;;  %v5903_v23 = vld [vmem:[#allocation26_spill] sm:$0xff]  ;;  %p3968_p3 = pnand %p3967_p2, %p3961_p13 }
 0x1b4   : > { %v3688_v17 = vpop.permute.xlu1 %3687  ;;  %v3683_v49 = vpop.permute.xlu0 %3682  ;;  %2157 = vmatprep.mubr.f32.mxu1 %v1906_v50 }
 0x1b5   : > { %2158 = vmatmul.mubr.f32.gmra.mxu1 %v1810_v58  ;;  %v3684_v30 = vunpack.i.l.bf16 %v3683_v49  ;;  %v3685_v15 = vunpack.i.h.bf16 %v3683_v49  ;;  %v3689_v54 = vunpack.i.l.bf16 %v3688_v17  ;;  %v3690_v6 = vunpack.i.h.bf16 %v3688_v17  ;;  %v5904_v17 = vld [vmem:[#allocation25_spill] sm:$0xff] }
 0x1b6   : > { %2162 = vmatprep.mubr.f32.mxu1 %v1907_v13 }
 0x1b7   : > { %v1844_v28 = vsel %vm1731_vm5, %v4898_v62, %v3684_v30  ;;  %v1746_v51 = vsel %vm1731_vm5, %v5903_v23, %v3685_v15  ;;  %v1845_v50 = vsel %vm1731_vm5, %v4895_v10, %v3689_v54  ;;  %v1747_v49 = vsel %vm1731_vm5, %v5904_v17, %v3690_v6 }
 0x1b8   : > { %v3693_v39 = vpop.permute.xlu1 %3692  ;;  %v3698_v9 = vpop.permute.xlu0 %3697 }
 0x1b9   : > { %2163 = vmatmul.mubr.f32.gmra.mxu1 %v1811_v22  ;;  %v3695_v4 = vunpack.i.h.bf16 %v3693_v39  ;;  %v3694_v60 = vunpack.i.l.bf16 %v3693_v39  ;;  %v3699_v44 = vunpack.i.l.bf16 %v3698_v9  ;;  %v3700_v7 = vunpack.i.h.bf16 %v3698_v9 }
 0x1bb   : > { %v1876_v61 = vsel %vm1764_vm6, %v1844_v28, %v3694_v60  ;;  %v1779_v55 = vsel %vm1764_vm6, %v1746_v51, %v3695_v4  ;;  %v1877_v59 = vsel %vm1764_vm6, %v1845_v50, %v3699_v44  ;;  %v1780_v53 = vsel %vm1764_vm6, %v1747_v49, %v3700_v7 }
 0x1bc   : > { %v3708_v3 = vpop.permute.xlu1 %3707  ;;  %v3703_v36 = vpop.permute.xlu0 %3702 }
 0x1bd   : > { %v3709_v35 = vunpack.i.l.bf16 %v3708_v3  ;;  %v3705_v16 = vunpack.i.h.bf16 %v3703_v36  ;;  %v3704_v26 = vunpack.i.l.bf16 %v3703_v36  ;;  %v3710_v62 = vunpack.i.h.bf16 %v3708_v3 }
 0x1bf   : > { %v1908_v47 = vsel %vm1797_vm7, %v1876_v61, %v3704_v26  ;;  %v1812_v24 = vsel %vm1797_vm7, %v1779_v55, %v3705_v16  ;;  %v1909_v42 = vsel %vm1797_vm7, %v1877_v59, %v3709_v35  ;;  %v1813_v10 = vsel %vm1797_vm7, %v1780_v53, %v3710_v62 }
 0x1c0   : > { %v3718_v58 = vpop.permute.xlu1 %3717  ;;  %v3713_v63 = vpop.permute.xlu0 %3712  ;;  %2167 = vmatprep.mubr.f32.mxu1 %v1908_v47 }
 0x1c1   : > { %2168 = vmatmul.mubr.f32.gmra.mxu1 %v1812_v24  ;;  %v3714_v13 = vunpack.i.l.bf16 %v3713_v63  ;;  %v3715_v5 = vunpack.i.h.bf16 %v3713_v63  ;;  %v3719_v9 = vunpack.i.l.bf16 %v3718_v58  ;;  %v3720_v28 = vunpack.i.h.bf16 %v3718_v58 }
 0x1c2   : > { %2172 = vmatprep.mubr.f32.mxu1 %v1909_v42 }
 0x1c3   : > { %v1846_v60 = vsel %vm1731_vm5, %v4984_v1, %v3714_v13  ;;  %v1748_v36 = vsel %vm1731_vm5, %v4654_v33, %v3715_v5  ;;  %v1847_v6 = vsel %vm1731_vm5, %v4981_v32, %v3719_v9  ;;  %v1749_v47 = vsel %vm1731_vm5, %v4651_v19, %v3720_v28  ;;  %v5906_v28 = vld [vmem:[#allocation29_spill] sm:$0xff] }
 0x1c4   : > { %v3723_v38 = vpop.permute.xlu1 %3722  ;;  %v3728_v29 = vpop.permute.xlu0 %3727 }
 0x1c5   : > { %2173 = vmatmul.mubr.f32.gmra.mxu1 %v1813_v10  ;;  %v3725_v30 = vunpack.i.h.bf16 %v3723_v38  ;;  %v3724_v39 = vunpack.i.l.bf16 %v3723_v38  ;;  %v3729_v22 = vunpack.i.l.bf16 %v3728_v29  ;;  %v3730_v26 = vunpack.i.h.bf16 %v3728_v29 }
 0x1c7   : > { %v1878_v35 = vsel %vm1764_vm6, %v1846_v60, %v3724_v39  ;;  %v1781_v16 = vsel %vm1764_vm6, %v1748_v36, %v3725_v30  ;;  %v1879_v7 = vsel %vm1764_vm6, %v1847_v6, %v3729_v22  ;;  %v1782_v24 = vsel %vm1764_vm6, %v1749_v47, %v3730_v26  ;;  %v5905_v60 = vld [vmem:[#allocation39_spill] sm:$0xff] }
 0x1c8   : > { %v3738_v15 = vpop.permute.xlu1 %3737  ;;  %v3733_v4 = vpop.permute.xlu0 %3732 }
 0x1c9   : > { %v3739_v54 = vunpack.i.l.bf16 %v3738_v15  ;;  %v3735_v44 = vunpack.i.h.bf16 %v3733_v4  ;;  %v3734_v3 = vunpack.i.l.bf16 %v3733_v4  ;;  %v3740_v1 = vunpack.i.h.bf16 %v3738_v15 }
 0x1cb   : > { %v1910_v23 = vsel %vm1797_vm7, %v1878_v35, %v3734_v3  ;;  %v1814_v51 = vsel %vm1797_vm7, %v1781_v16, %v3735_v44  ;;  %v1911_v33 = vsel %vm1797_vm7, %v1879_v7, %v3739_v54  ;;  %v1815_v32 = vsel %vm1797_vm7, %v1782_v24, %v3740_v1 }
 0x1cc   : > { %v3748_v61 = vpop.permute.xlu1 %3747  ;;  %v3743_v55 = vpop.permute.xlu0 %3742  ;;  %2177 = vmatprep.mubr.f32.mxu1 %v1910_v23 }
 0x1cd   : > { %2178 = vmatmul.mubr.f32.gmra.mxu1 %v1814_v51  ;;  %v3744_v50 = vunpack.i.l.bf16 %v3743_v55  ;;  %v3745_v63 = vunpack.i.h.bf16 %v3743_v55  ;;  %v3749_v17 = vunpack.i.l.bf16 %v3748_v61  ;;  %v3750_v30 = vunpack.i.h.bf16 %v3748_v61 }
 0x1ce   : > { %2182 = vmatprep.mubr.f32.mxu1 %v1911_v33 }
 0x1cf   : > { %v1848_v38 = vsel %vm1731_vm5, %v5020_v56, %v3744_v50  ;;  %v1750_v5 = vsel %vm1731_vm5, %v4686_v52, %v3745_v63  ;;  %v1849_v54 = vsel %vm1731_vm5, %v5905_v60, %v3749_v17  ;;  %v1751_v35 = vsel %vm1731_vm5, %v5906_v28, %v3750_v30  ;;  %v5907_v63 = vld [vmem:[#allocation31_spill] sm:$0xff] }
 0x1d0   : > { %v3753_v62 = vpop.permute.xlu1 %3752  ;;  %v3758_v58 = vpop.permute.xlu0 %3757 }
 0x1d1   : > { %2183 = vmatmul.mubr.f32.gmra.mxu1 %v1815_v32  ;;  %v3755_v59 = vunpack.i.h.bf16 %v3753_v62  ;;  %v3754_v42 = vunpack.i.l.bf16 %v3753_v62  ;;  %v3759_v49 = vunpack.i.l.bf16 %v3758_v58  ;;  %v3760_v22 = vunpack.i.h.bf16 %v3758_v58 }
 0x1d3   : > { %v1880_v39 = vsel %vm1764_vm6, %v1848_v38, %v3754_v42  ;;  %v1783_v9 = vsel %vm1764_vm6, %v1750_v5, %v3755_v59  ;;  %v1881_v36 = vsel %vm1764_vm6, %v1849_v54, %v3759_v49  ;;  %v1784_v16 = vsel %vm1764_vm6, %v1751_v35, %v3760_v22  ;;  %v2525_v22 = vld [vmem:[%s5792_s6 + $0x8] sm:$0xff] }
 0x1d4   : > { %v3768_v53 = vpop.permute.xlu1 %3767  ;;  %v3763_v13 = vpop.permute.xlu0 %3762  ;;  %3409 = vmatpush3.msra.mxu0 %v2525_v22 }
 0x1d5   : > { %v3769_v29 = vunpack.i.l.bf16 %v3768_v53  ;;  %v3765_v19 = vunpack.i.h.bf16 %v3763_v13  ;;  %v3764_v10 = vunpack.i.l.bf16 %v3763_v13  ;;  %v3770_v56 = vunpack.i.h.bf16 %v3768_v53 }
 0x1d7   : > { %v1912_v15 = vsel %vm1797_vm7, %v1880_v39, %v3764_v10  ;;  %v1816_v4 = vsel %vm1797_vm7, %v1783_v9, %v3765_v19  ;;  %v1913_v52 = vsel %vm1797_vm7, %v1881_v36, %v3769_v29  ;;  %v1817_v6 = vsel %vm1797_vm7, %v1784_v16, %v3770_v56  ;;  %v5908_v39 = vld [vmem:[#allocation30_spill] sm:$0xff] }
 0x1d8   : > { %v3778_v44 = vpop.permute.xlu1 %3777  ;;  %v3773_v3 = vpop.permute.xlu0 %3772  ;;  %2187 = vmatprep.mubr.f32.mxu1 %v1912_v15 }
 0x1d9   : > { %2188 = vmatmul.mubr.f32.gmra.mxu1 %v1816_v4  ;;  %v3774_v26 = vunpack.i.l.bf16 %v3773_v3  ;;  %v3775_v1 = vunpack.i.h.bf16 %v3773_v3  ;;  %v3779_v7 = vunpack.i.l.bf16 %v3778_v44  ;;  %v3780_v42 = vunpack.i.h.bf16 %v3778_v44 }
 0x1da   : > { %2192 = vmatprep.mubr.f32.mxu1 %v1913_v52  ;;  %v5909_v44 = vmov 0.0  }
 0x1db   : > { %v1850_v50 = vsel %vm1731_vm5, %v5047_v34, %v3774_v26  ;;  %v1752_v59 = vsel %vm1731_vm5, %v5907_v63, %v3775_v1  ;;  %v1851_v29 = vsel %vm1731_vm5, %v5044_v43, %v3779_v7  ;;  %v1753_v9 = vsel %vm1731_vm5, %v5908_v39, %v3780_v42  ;;  %v2524_v43 = vld [vmem:[%s5792_s6] sm:$0xff]  ;;  %3410 = vmatprep.subr.mxu0 %v5909_v44 }
 0x1dc   : > { %v3783_v23 = vpop.permute.xlu1 %3782  ;;  %v3788_v51 = vpop.permute.xlu0 %3787  ;;  %3412 = vmatprep.mubr.msk.f32.mxu0 %vm4025_vm8, %v5909_v44  ;;  %3411 = vmatpush3.msra.mxu0 %v2524_v43 }
 0x1dd   : > { %2193 = vmatmul.mubr.f32.gmra.mxu1 %v1817_v6  ;;  %v3785_v61 = vunpack.i.h.bf16 %v3783_v23  ;;  %v3784_v55 = vunpack.i.l.bf16 %v3783_v23  ;;  %v3789_v33 = vunpack.i.l.bf16 %v3788_v51  ;;  %v3790_v53 = vunpack.i.h.bf16 %v3788_v51 }
 0x1df   : > { %v1882_v17 = vsel %vm1764_vm6, %v1850_v50, %v3784_v55  ;;  %v1785_v49 = vsel %vm1764_vm6, %v1752_v59, %v3785_v61  ;;  %v1883_v5 = vsel %vm1764_vm6, %v1851_v29, %v3789_v33  ;;  %v1786_v15 = vsel %vm1764_vm6, %v1753_v9, %v3790_v53  ;;  %v5910_v59 = vld [vmem:[#allocation34_spill] sm:$0xff] }
 0x1e0   : > { %v3798_v47 = vpop.permute.xlu1 %3797  ;;  %v3793_v24 = vpop.permute.xlu0 %3792 }
 0x1e1   : > { %v3799_v62 = vunpack.i.l.bf16 %v3798_v47  ;;  %v3795_v58 = vunpack.i.h.bf16 %v3793_v24  ;;  %v3794_v32 = vunpack.i.l.bf16 %v3793_v24  ;;  %v3800_v34 = vunpack.i.h.bf16 %v3798_v47 }
 0x1e3   : > { %v1914_v13 = vsel %vm1797_vm7, %v1882_v17, %v3794_v32  ;;  %v1818_v38 = vsel %vm1797_vm7, %v1785_v49, %v3795_v58  ;;  %v1915_v30 = vsel %vm1797_vm7, %v1883_v5, %v3799_v62  ;;  %v1819_v56 = vsel %vm1797_vm7, %v1786_v15, %v3800_v34 }
 0x1e4   : > { %v3808_v19 = vpop.permute.xlu1 %3807  ;;  %v3803_v10 = vpop.permute.xlu0 %3802  ;;  %2197 = vmatprep.mubr.f32.mxu1 %v1914_v13 }
 0x1e5   : > { %2198 = vmatmul.mubr.f32.gmra.mxu1 %v1818_v38  ;;  %v3804_v4 = vunpack.i.l.bf16 %v3803_v10  ;;  %v3805_v3 = vunpack.i.h.bf16 %v3803_v10  ;;  %v3809_v28 = vunpack.i.l.bf16 %v3808_v19  ;;  %v3810_v55 = vunpack.i.h.bf16 %v3808_v19 }
 0x1e6   : > { %2202 = vmatprep.mubr.f32.mxu1 %v1915_v30 }
 0x1e7   : > { %v1852_v23 = vsel %vm1731_vm5, %v5082_v41, %v3804_v4  ;;  %v1754_v61 = vsel %vm1731_vm5, %v4759_v18, %v3805_v3  ;;  %v1853_v62 = vsel %vm1731_vm5, %v5079_v20, %v3809_v28  ;;  %v1755_v42 = vsel %vm1731_vm5, %v5910_v59, %v3810_v55 }
 0x1e8   : > { %v3813_v60 = vpop.permute.xlu1 %3812  ;;  %v3818_v54 = vpop.permute.xlu0 %3817 }
 0x1e9   : > { %2203 = vmatmul.mubr.f32.gmra.mxu1 %v1819_v56  ;;  %v3815_v36 = vunpack.i.h.bf16 %v3813_v60  ;;  %v3814_v52 = vunpack.i.l.bf16 %v3813_v60  ;;  %v3819_v35 = vunpack.i.l.bf16 %v3818_v54  ;;  %v3820_v47 = vunpack.i.h.bf16 %v3818_v54 }
 0x1eb   : > { %v1884_v7 = vsel %vm1764_vm6, %v1852_v23, %v3814_v52  ;;  %v1787_v33 = vsel %vm1764_vm6, %v1754_v61, %v3815_v36  ;;  %v1885_v63 = vsel %vm1764_vm6, %v1853_v62, %v3819_v35  ;;  %v1788_v17 = vsel %vm1764_vm6, %v1755_v42, %v3820_v47 }
 0x1ec   : > { %v3828_v16 = vpop.permute.xlu1 %3827  ;;  %v3823_v26 = vpop.permute.xlu0 %3822 }
 0x1ed   : > { %v3829_v51 = vunpack.i.l.bf16 %v3828_v16  ;;  %v3825_v6 = vunpack.i.h.bf16 %v3823_v26  ;;  %v3824_v1 = vunpack.i.l.bf16 %v3823_v26  ;;  %v3830_v41 = vunpack.i.h.bf16 %v3828_v16 }
 0x1ef   : > { %v1916_v24 = vsel %vm1797_vm7, %v1884_v7, %v3824_v1  ;;  %v1820_v50 = vsel %vm1797_vm7, %v1787_v33, %v3825_v6  ;;  %v1917_v18 = vsel %vm1797_vm7, %v1885_v63, %v3829_v51  ;;  %v1821_v20 = vsel %vm1797_vm7, %v1788_v17, %v3830_v41 }
 0x1f0   : > { %v3838_v58 = vpop.permute.xlu1 %3837  ;;  %v3833_v32 = vpop.permute.xlu0 %3832  ;;  %2207 = vmatprep.mubr.f32.mxu1 %v1916_v24 }
 0x1f1   : > { %2208 = vmatmul.mubr.f32.gmra.mxu1 %v1820_v50  ;;  %v3834_v49 = vunpack.i.l.bf16 %v3833_v32  ;;  %v3835_v38 = vunpack.i.h.bf16 %v3833_v32  ;;  %v3839_v19 = vunpack.i.l.bf16 %v3838_v58  ;;  %v3840_v4 = vunpack.i.h.bf16 %v3838_v58 }
 0x1f2   : > { %2212 = vmatprep.mubr.f32.mxu1 %v1917_v18 }
 0x1f3   : > { %v1854_v39 = vsel %vm1731_vm5, %v5119_v0, %v3834_v49  ;;  %v1756_v15 = vsel %vm1731_vm5, %v4816_v57, %v3835_v38  ;;  %v1855_v52 = vsel %vm1731_vm5, %v5116_v21, %v3839_v19  ;;  %v1757_v26 = vsel %vm1731_vm5, %v4813_v40, %v3840_v4 }
 0x1f4   : > { %v3843_v53 = vpop.permute.xlu1 %3842  ;;  %v3848_v13 = vpop.permute.xlu0 %3847 }
 0x1f5   : > { %2213 = vmatmul.mubr.f32.gmra.mxu1 %v1821_v20  ;;  %v3845_v29 = vunpack.i.h.bf16 %v3843_v53  ;;  %v3844_v34 = vunpack.i.l.bf16 %v3843_v53  ;;  %v3849_v10 = vunpack.i.l.bf16 %v3848_v13  ;;  %v3850_v56 = vunpack.i.h.bf16 %v3848_v13 }
 0x1f7   : > { %v1886_v60 = vsel %vm1764_vm6, %v1854_v39, %v3844_v34  ;;  %v1789_v54 = vsel %vm1764_vm6, %v1756_v15, %v3845_v29  ;;  %v1887_v16 = vsel %vm1764_vm6, %v1855_v52, %v3849_v10  ;;  %v1790_v23 = vsel %vm1764_vm6, %v1757_v26, %v3850_v56 }
 0x1f8   : > { %v3858_v5 = vpop.permute.xlu1 %3857  ;;  %v3853_v30 = vpop.permute.xlu0 %3852 }
 0x1f9   : > { %v3859_v9 = vunpack.i.l.bf16 %v3858_v5  ;;  %v3855_v22 = vunpack.i.h.bf16 %v3853_v30  ;;  %v3854_v43 = vunpack.i.l.bf16 %v3853_v30  ;;  %v3860_v0 = vunpack.i.h.bf16 %v3858_v5 }
 0x1fb   : > { %v1918_v3 = vsel %vm1797_vm7, %v1886_v60, %v3854_v43  ;;  %v1822_v36 = vsel %vm1797_vm7, %v1789_v54, %v3855_v22  ;;  %v1919_v57 = vsel %vm1797_vm7, %v1887_v16, %v3859_v9  ;;  %v1823_v21 = vsel %vm1797_vm7, %v1790_v23, %v3860_v0 }
 0x1fc   : > { %v3868_v28 = vpop.permute.xlu1 %3867  ;;  %v3863_v35 = vpop.permute.xlu0 %3862  ;;  %2217 = vmatprep.mubr.f32.mxu1 %v1918_v3 }
 0x1fd   : > { %2218 = vmatmul.mubr.f32.gmra.mxu1 %v1822_v36  ;;  %v3864_v51 = vunpack.i.l.bf16 %v3863_v35  ;;  %v3865_v61 = vunpack.i.h.bf16 %v3863_v35  ;;  %v3869_v33 = vunpack.i.l.bf16 %v3868_v28  ;;  %v3870_v63 = vunpack.i.h.bf16 %v3868_v28 }
 0x1fe   : > { %2222 = vmatprep.mubr.f32.mxu1 %v1919_v57 }
 0x1ff   : > { %v1856_v62 = vsel %vm1731_vm5, %v5165_v31, %v3864_v51  ;;  %v1758_v32 = vsel %vm1731_vm5, %v4848_v45, %v3865_v61  ;;  %v1857_v53 = vsel %vm1731_vm5, %v5162_v37, %v3869_v33  ;;  %v1759_v29 = vsel %vm1731_vm5, %v4845_v27, %v3870_v63 }
 0x200   : > { %v3873_v6 = vpop.permute.xlu1 %3872  ;;  %v3878_v1 = vpop.permute.xlu0 %3877 }
 0x201   : > { %2223 = vmatmul.mubr.f32.gmra.mxu1 %v1823_v21  ;;  %v3875_v55 = vunpack.i.h.bf16 %v3873_v6  ;;  %v3874_v7 = vunpack.i.l.bf16 %v3873_v6  ;;  %v3879_v47 = vunpack.i.l.bf16 %v3878_v1  ;;  %v3880_v42 = vunpack.i.h.bf16 %v3878_v1 }
 0x203   : > { %v1888_v18 = vsel %vm1764_vm6, %v1856_v62, %v3874_v7  ;;  %v1791_v59 = vsel %vm1764_vm6, %v1758_v32, %v3875_v55  ;;  %v1889_v38 = vsel %vm1764_vm6, %v1857_v53, %v3879_v47  ;;  %v1792_v34 = vsel %vm1764_vm6, %v1759_v29, %v3880_v42 }
 0x204   : > { %v3888_v24 = vpop.permute.xlu1 %3887  ;;  %v3883_v50 = vpop.permute.xlu0 %3882  ;;  %v2516_v29 = vlaneseq }
 0x205   : > { %v3889_v41 = vunpack.i.l.bf16 %v3888_v24  ;;  %v3885_v40 = vunpack.i.h.bf16 %v3883_v50  ;;  %v3884_v58 = vunpack.i.l.bf16 %v3883_v50  ;;  %v3890_v31 = vunpack.i.h.bf16 %v3888_v24 }
 0x207   : > { %v1920_v17 = vsel %vm1797_vm7, %v1888_v18, %v3884_v58  ;;  %v1824_v49 = vsel %vm1797_vm7, %v1791_v59, %v3885_v40  ;;  %v1921_v45 = vsel %vm1797_vm7, %v1889_v38, %v3889_v41  ;;  %v1825_v5 = vsel %vm1797_vm7, %v1792_v34, %v3890_v31 }
 0x208   : > { %v3898_v13 = vpop.permute.xlu1 %3897  ;;  %v3893_v20 = vpop.permute.xlu0 %3892  ;;  %2227 = vmatprep.mubr.f32.mxu1 %v1920_v17  ;;  %v2517_v34 = vand.u32 127, %v2516_v29 }
 0x209   : > { %2228 = vmatmul.mubr.f32.gmra.mxu1 %v1824_v49  ;;  %v3895_v37 = vunpack.i.h.bf16 %v3893_v20  ;;  %v3894_v30 = vunpack.i.l.bf16 %v3893_v20  ;;  %v3900_v22 = vunpack.i.h.bf16 %v3898_v13  ;;  %v3899_v43 = vunpack.i.l.bf16 %v3898_v13 }
 0x20a   : > { %2232 = vmatprep.mubr.f32.mxu1 %v1921_v45 }
 0x20b   : > { %v1858_v27 = vsel %vm1731_vm5, %v5212_v12, %v3894_v30  ;;  %v1760_v56 = vsel %vm1731_vm5, %v4888_v46, %v3895_v37  ;;  %v1859_v26 = vsel %vm1731_vm5, %v5209_v8, %v3899_v43  ;;  %v1761_v12 = vsel %vm1731_vm5, %v4891_v2, %v3900_v22 }
 0x20c   : > { %v3903_v19 = vpop.permute.xlu1 %3902  ;;  %v3913_v10 = vpop.permute.xlu0 %3912 }
 0x20d   : > { %2233 = vmatmul.mubr.f32.gmra.mxu1 %v1825_v5  ;;  %v3905_v39 = vunpack.i.h.bf16 %v3903_v19  ;;  %v3904_v9 = vunpack.i.l.bf16 %v3903_v19  ;;  %v3915_v3 = vunpack.i.h.bf16 %v3913_v10  ;;  %v3914_v36 = vunpack.i.l.bf16 %v3913_v10 }
 0x20f   : > { %v1890_v52 = vsel %vm1764_vm6, %v1858_v27, %v3904_v9  ;;  %v1793_v0 = vsel %vm1764_vm6, %v1760_v56, %v3905_v39  ;;  %v1891_v1 = vsel %vm1764_vm6, %v1859_v26, %v3914_v36  ;;  %v1794_v21 = vsel %vm1764_vm6, %v1761_v12, %v3915_v3  ;;  %v5488_v9 = vpop.f32.mrf.mxu0 }
 0x210   : > { %v3908_v15 = vpop.permute.xlu1 %3907  ;;  %v3918_v4 = vpop.permute.xlu0 %3917  ;;  %5913 = vst [vmem:[#allocation14_spill] sm:$0xff] %v5488_v9 }
 0x211   : > { %v3920_v60 = vunpack.i.h.bf16 %v3918_v4  ;;  %v3919_v54 = vunpack.i.l.bf16 %v3918_v4  ;;  %v3910_v2 = vunpack.i.h.bf16 %v3908_v15  ;;  %v3909_v33 = vunpack.i.l.bf16 %v3908_v15  ;;  %v5492_v15 = vpop.f32.mrf.mxu0 }
 0x212   : > { %5914 = vst [vmem:[#allocation5_spill] sm:$0xff] %v5492_v15 }
 0x213   : > { %v1922_v28 = vsel %vm1797_vm7, %v1890_v52, %v3919_v54  ;;  %v1826_v35 = vsel %vm1797_vm7, %v1793_v0, %v3920_v60  ;;  %v5494_v4 = vpop.f32.mrf.mxu0 }
 0x214   : > { %v3923_v16 = vpop.permute.xlu1 %3922  ;;  %v3928_v57 = vpop.permute.xlu0 %3927  ;;  %2237 = vmatprep.mubr.f32.mxu1 %v1922_v28  ;;  %5915 = vst [vmem:[#allocation20_spill] sm:$0xff] %v5494_v4  ;;  %v5509_v28 = vld [vmem:[%s5791_s5] ss:$0 sm:$0xff] }
 0x215   : > { %v3925_v46 = vunpack.i.h.bf16 %v3923_v16  ;;  %v3924_v23 = vunpack.i.l.bf16 %v3923_v16  ;;  %v3930_v51 = vunpack.i.h.bf16 %v3928_v57  ;;  %v3929_v6 = vunpack.i.l.bf16 %v3928_v57  ;;  %2238 = vmatmul.mubr.f32.gmra.mxu1 %v1826_v35  ;;  %v5498_v54 = vpop.f32.mrf.mxu0 }
 0x216   : > { %5916 = vst [vmem:[#allocation10_spill] sm:$0xff] %v5498_v54 }
 0x217   : > { %v1923_v61 = vsel %vm1797_vm7, %v1891_v1, %v3924_v23  ;;  %v1827_v55 = vsel %vm1797_vm7, %v1794_v21, %v3925_v46  ;;  %v1860_v7 = vsel %vm1731_vm5, %v4975_v25, %v3929_v6  ;;  %v1762_v8 = vsel %vm1731_vm5, %v4911_v48, %v3930_v51  ;;  %v5500_v56 = vpop.f32.mrf.mxu0 }
 0x218   : > { %v3943_v47 = vpop.permute.xlu1 %3942  ;;  %v3933_v24 = vpop.permute.xlu0 %3932  ;;  %2242 = vmatprep.mubr.f32.mxu1 %v1923_v61  ;;  %v1892_v58 = vsel %vm1764_vm6, %v1860_v7, %v3909_v33  ;;  %v1795_v32 = vsel %vm1764_vm6, %v1762_v8, %v3910_v2 }
 0x219   : > { %v3935_v50 = vunpack.i.h.bf16 %v3933_v24  ;;  %v3934_v62 = vunpack.i.l.bf16 %v3933_v24  ;;  %2243 = vmatmul.mubr.f32.gmra.mxu1 %v1827_v55  ;;  %v3945_v41 = vunpack.i.h.bf16 %v3943_v47  ;;  %v3944_v40 = vunpack.i.l.bf16 %v3943_v47  ;;  %v5504_v52 = vpop.f32.mrf.mxu0 }
 0x21b   : > { %v1924_v63 = vsel %vm1797_vm7, %v1892_v58, %v3934_v62  ;;  %v1828_v25 = vsel %vm1797_vm7, %v1795_v32, %v3935_v50  ;;  %v1861_v53 = vsel %vm1731_vm5, %v4978_v14, %v3944_v40  ;;  %v1763_v31 = vsel %vm1731_vm5, %v5881_v11, %v3945_v41  ;;  %v3371_v0 = vpop.f32.mrf.mxu0 }
 0x21c   : > { %v3948_v18 = vpop.permute.xlu1 %3947  ;;  %v3938_v48 = vpop.permute.xlu0 %3937  ;;  %2247 = vmatprep.mubr.f32.mxu1 %v1924_v63 }
 0x21d   : > { %v3950_v59 = vunpack.i.h.bf16 %v3948_v18  ;;  %v3949_v42 = vunpack.i.l.bf16 %v3948_v18  ;;  %v3940_v17 = vunpack.i.h.bf16 %v3938_v48  ;;  %v3939_v49 = vunpack.i.l.bf16 %v3938_v48  ;;  %2248 = vmatmul.mubr.f32.gmra.mxu1 %v1828_v25  ;;  %v2354_v57 = vpop.f32.mrf.mxu0 }
 0x21f   : > { %v1893_v13 = vsel %vm1764_vm6, %v1861_v53, %v3939_v49  ;;  %v1796_v20 = vsel %vm1764_vm6, %v1763_v31, %v3940_v17  ;;  %v5535_v17 = vpop.f32.mrf.mxu0 }
 0x220   : > { %v1925_v38 = vsel %vm1797_vm7, %v1893_v13, %v3949_v42  ;;  %v1829_v45 = vsel %vm1797_vm7, %v1796_v20, %v3950_v59 }
 0x221   : > { %2252 = vmatprep.mubr.f32.mxu1 %v1925_v38  ;;  %v5539_v31 = vpop.f32.mrf.mxu0 }
 0x222   : > { %2253 = vmatmul.mubr.f32.gmra.mxu1 %v1829_v45 }
 0x223   : > { %v5541_v13 = vpop.f32.mrf.mxu0 }
 0x225   : > { %v5545_v38 = vpop.f32.mrf.mxu0 }
 0x227   : > { %v3380_v29 = vpop.f32.mrf.mxu0 }
 0x229   : > { %v2520_v19 = vpop.permute.xlu0 %2519 }
 0x22a   : > { %vm2521_vm10 = vcmp.eq.s32.totalorder %v2520_v19, %v2517_v34 }
 0x22b   : > { %v5480_v10 = vpop.f32.mrf.mxu1  ;;  %v3102_v14 = vsel %vm2521_vm10, 1.0, %v5909_v44 }
 0x22c   : > { %5911 = vst [vmem:[#allocation11_spill] sm:$0xff] %v5480_v10  ;;  %3413 = vmatmul.mubr.msk.f32.vlgmr.msra.gmra.mxu0 %vm2526_vm9, %v3102_v14  ;;  %v5549_v14 = vpop.f32.mrf.mxu0 }
 0x22d   : > { %v2101_v11 = vpop.f32.mrf.mxu1 }
 0x22e   : > { %v3383_v11 = vpop.f32.mrf.mxu0 }
 0x22f   : > { %v5484_v5 = vpop.f32.mrf.mxu1 }
 0x230   : > { %5912 = vst [vmem:[#allocation6_spill] sm:$0xff] %v5484_v5 }
 0x231   : > { %v2106_v37 = vpop.f32.mrf.mxu1 }
 0x239   : > { %v5486_v30 = vpop.f32.mrf.mxu1 }
 0x23b   : > { %v2111_v39 = vpop.f32.mrf.mxu1 }
 0x23c   : > { %v2394_v39 = vpop.f32.mrf.mxu0 }
 0x23d   : > { %v5490_v22 = vpop.f32.mrf.mxu1 }
 0x23f   : > { %v2116_v43 = vpop.f32.mrf.mxu1 }
 0x245   : > { %v5496_v60 = vpop.f32.mrf.mxu1 }
 0x247   : > { %v2121_v27 = vpop.f32.mrf.mxu1 }
 0x248   : > { %v5553_v27 = vpop.f32.mrf.mxu0 }
 0x249   : > { %v5502_v3 = vpop.f32.mrf.mxu1  ;;  %5920 = vst [vmem:[#allocation24_spill] sm:$0xff] %v5553_v27 }
 0x24b   : > { %v2126_v36 = vpop.f32.mrf.mxu1 }
 0x251   : > { %v2129_v35 = vpop.f32.mrf.mxu1 }
 0x252   : > { %v2130_v16 = vadd.f32 %v5509_v28, %v2129_v35  ;;  %v5557_v35 = vpop.f32.mrf.mxu0 }
 0x253   : > { %v2131_v26 = vpop.f32.mrf.mxu1  ;;  %5921 = vst [vmem:[#allocation13_spill] sm:$0xff] %v5557_v35 }
 0x254   : > { %v5512_v12 = vadd.f32 %v2354_v57, %v2130_v16  ;;  %v5559_v16 = vpop.f32.mrf.mxu0 }
 0x255   : > { %v2134_v46 = vpop.f32.mrf.mxu1  ;;  %5922 = vst [vmem:[#allocation23_spill] sm:$0xff] %v5559_v16 }
 0x256   : > { %5917 = vst [vmem:[#allocation19_spill] sm:$0xff] %v5512_v12  ;;  %v2135_v23 = vadd.f32 %v5509_v28, %v2134_v46  ;;  %v5563_v26 = vpop.f32.mrf.mxu0 }
 0x257   : > { %v2136_v51 = vpop.f32.mrf.mxu1  ;;  %5923 = vst [vmem:[#allocation12_spill] sm:$0xff] %v5563_v26 }
 0x258   : > { %v5515_v6 = vadd.f32 %v3371_v0, %v2135_v23  ;;  %v5565_v23 = vpop.f32.mrf.mxu0 }
 0x25d   : > { %v5517_v1 = vpop.f32.mrf.mxu1 }
 0x25f   : > { %v2141_v21 = vpop.f32.mrf.mxu1 }
 0x261   : > { %v5519_v61 = vpop.f32.mrf.mxu1 }
 0x263   : > { %v2146_v55 = vpop.f32.mrf.mxu1 }
 0x264   : > { %v5567_v55 = vpop.f32.mrf.mxu0 }
 0x269   : > { %v5521_v7 = vpop.f32.mrf.mxu1 }
 0x26b   : > { %v2151_v8 = vpop.f32.mrf.mxu1 }
 0x26c   : > { %v5569_v8 = vpop.f32.mrf.mxu0 }
 0x26d   : > { %v5523_v2 = vpop.f32.mrf.mxu1 }
 0x26f   : > { %v2156_v33 = vpop.f32.mrf.mxu1 }
 0x275   : > { %v5525_v47 = vpop.f32.mrf.mxu1 }
 0x277   : > { %v2161_v24 = vpop.f32.mrf.mxu1 }
 0x278   : > { %v5571_v24 = vpop.f32.mrf.mxu0 }
 0x279   : > { %v5527_v50 = vpop.f32.mrf.mxu1 }
 0x27b   : > { %v2166_v62 = vpop.f32.mrf.mxu1 }
 0x281   : > { %v2169_v41 = vpop.f32.mrf.mxu1 }
 0x282   : > { %v2170_v27 = vadd.f32 %v5509_v28, %v2169_v41 }
 0x283   : > { %v2171_v40 = vpop.f32.mrf.mxu1 }
 0x284   : > { %v5573_v40 = vpop.f32.mrf.mxu0 }
 0x285   : > { %v2174_v58 = vpop.f32.mrf.mxu1 }
 0x286   : > { %v2175_v9 = vadd.f32 %v5509_v28, %v2174_v58  ;;  %v2395_v58 = vadd.f32 %v2394_v39, %v2170_v27 }
 0x287   : > { %v2176_v32 = vpop.f32.mrf.mxu1 }
 0x28d   : > { %v5529_v63 = vpop.f32.mrf.mxu1 }
 0x28e   : > { %5918 = vst [vmem:[#allocation9_spill] sm:$0xff] %v5529_v63 }
 0x28f   : > { %v2181_v25 = vpop.f32.mrf.mxu1 }
 0x291   : > { %v5531_v18 = vpop.f32.mrf.mxu1 }
 0x292   : > { %5919 = vst [vmem:[#allocation37_spill] sm:$0xff] %v5531_v18 }
 0x293   : > { %v2186_v48 = vpop.f32.mrf.mxu1 }
 0x294   : > { %v5575_v48 = vpop.f32.mrf.mxu0 }
 0x299   : > { %v5533_v59 = vpop.f32.mrf.mxu1 }
 0x29b   : > { %v2191_v42 = vpop.f32.mrf.mxu1 }
 0x29c   : > { %v3401_v42 = vpop.f32.mrf.mxu0 }
 0x29d   : > { %v5537_v49 = vpop.f32.mrf.mxu1 }
 0x29f   : > { %v2196_v53 = vpop.f32.mrf.mxu1 }
 0x2a5   : > { %v5543_v20 = vpop.f32.mrf.mxu1 }
 0x2a7   : > { %v2201_v45 = vpop.f32.mrf.mxu1 }
 0x2a8   : > { %v2454_v45 = vpop.f32.mrf.mxu0 }
 0x2a9   : > { %v5547_v34 = vpop.f32.mrf.mxu1 }
 0x2ab   : > { %v2206_v19 = vpop.f32.mrf.mxu1 }
 0x2b1   : > { %v5551_v37 = vpop.f32.mrf.mxu1 }
 0x2b3   : > { %v2211_v43 = vpop.f32.mrf.mxu1 }
 0x2b4   : > { %v3404_v43 = vpop.f32.mrf.mxu0 }
 0x2b5   : > { %v5555_v36 = vpop.f32.mrf.mxu1 }
 0x2b7   : > { %v2216_v0 = vpop.f32.mrf.mxu1 }
 0x2bd   : > { %v5561_v57 = vpop.f32.mrf.mxu1 }
 0x2bf   : > { %v2221_v46 = vpop.f32.mrf.mxu1 }
 0x2c1   : > { %v2224_v51 = vpop.f32.mrf.mxu1 }
 0x2c3   : > { %v2226_v21 = vpop.f32.mrf.mxu1 }
 0x2c4   : > { %v2464_v21 = vpop.f32.mrf.mxu0 }
 0x2c6   : > { %v3407_v15 = vpop.f32.mrf.mxu0 }
 0x2c9   : > { %v2229_v33 = vpop.f32.mrf.mxu1 }
 0x2cb   : > { %v2231_v62 = vpop.f32.mrf.mxu1 }
 0x2cd   : > { %v2234_v32 = vpop.f32.mrf.mxu1 }
 0x2ce   : > { %v2235_v41 = vadd.f32 %v5509_v28, %v2234_v32 }
 0x2cf   : > { %v2236_v25 = vpop.f32.mrf.mxu1 }
 0x2d0   : > { %v2474_v25 = vpop.f32.mrf.mxu0 }
 0x2d5   : > { %v2239_v53 = vpop.f32.mrf.mxu1 }
 0x2d6   : > { %v2240_v4 = vadd.f32 %v5509_v28, %v2239_v53 }
 0x2d7   : > { %v2241_v19 = vpop.f32.mrf.mxu1 }
 0x2d8   : > { %v2165_v19 = vadd.f32 %v5509_v28, %v5527_v50  ;;  %v2465_v50 = vadd.f32 %v2464_v21, %v2240_v4  ;;  %v2145_v4 = vadd.f32 %v5509_v28, %v5519_v61  ;;  %v2140_v61 = vadd.f32 %v5509_v28, %v5517_v1 }
 0x2d9   : > { %v2244_v0 = vpop.f32.mrf.mxu1 }
 0x2da   : > { %v2245_v10 = vadd.f32 %v5509_v28, %v2244_v0  ;;  %v2390_v0 = vadd.f32 %v3380_v29, %v2165_v19  ;;  %v2511_v39 = vmax.f32 %v2465_v50, 0.0  ;;  %v5624_v1 = vadd.f32 %v5535_v17, %v2145_v4 }
 0x2db   : > { %v2246_v46 = vpop.f32.mrf.mxu1  ;;  %v2205_v17 = vadd.f32 %v5509_v28, %v5547_v34 }
 0x2dc   : > { %v2400_v46 = vadd.f32 %v3383_v11, %v2175_v9  ;;  %v2470_v16 = vadd.f32 %v3404_v43, %v2245_v10  ;;  %v2230_v9 = vadd.f32 %v5509_v28, %v2229_v33  ;;  %v2497_v11 = vmax.f32 %v2395_v58, 0.0  ;;  %v5926_v58 = vld [vmem:[#allocation23_spill] sm:$0xff] }
 0x2dd   : > { %v2249_v44 = vpop.f32.mrf.mxu1  ;;  %v2225_v10 = vadd.f32 %v5509_v28, %v2224_v51  ;;  %v2210_v33 = vadd.f32 %v5509_v28, %v5551_v37 }
 0x2de   : > { %v2250_v62 = vadd.f32 %v5509_v28, %v2249_v44  ;;  %v2160_v44 = vadd.f32 %v5509_v28, %v5525_v47  ;;  %v2498_v12 = vmax.f32 %v2400_v46, 0.0  ;;  %v2110_v46 = vadd.f32 %v5509_v28, %v5486_v30 }
 0x2df   : > { %v2251_v35 = vpop.f32.mrf.mxu1  ;;  %v5651_v43 = vadd.f32 %v5571_v24, %v2210_v33  ;;  %v2115_v24 = vadd.f32 %v5509_v28, %v5490_v22  ;;  %v5924_v22 = vld [vmem:[#allocation19_spill] sm:$0xff] }
 0x2e0   : > { %v2475_v35 = vadd.f32 %v2474_v25, %v2250_v62  ;;  %v2385_v47 = vadd.f32 %v5549_v14, %v2160_v44  ;;  %v5607_v14 = vadd.f32 %v2454_v45, %v2230_v9  ;;  %v2200_v45 = vadd.f32 %v5509_v28, %v5543_v20  ;;  %v5929_v9 = vld [vmem:[#allocation9_spill] sm:$0xff] }
 0x2e1   : > { %v5661_v62 = vadd.f32 %v5565_v23, %v2205_v17  ;;  %v2490_v25 = vmax.f32 %v5515_v6, 0.0  ;;  %v2505_v19 = vmax.f32 %v5651_v43, 0.0  ;;  %v2489_v44 = vmax.f32 %v5924_v22, 0.0 }
 0x2e2   : > { %v2254_v54 = vpop.f32.mrf.mxu1  ;;  %v2495_v27 = vmax.f32 %v2385_v47, 0.0  ;;  %v2425_v23 = vadd.f32 %v5567_v55, %v2200_v45  ;;  %v2180_v50 = vadd.f32 %v5509_v28, %v5929_v9 }
 0x2e3   : > { %v2255_v26 = vadd.f32 %v5509_v28, %v2254_v54  ;;  %v2155_v54 = vadd.f32 %v5509_v28, %v5523_v2  ;;  %v2512_v2 = vmax.f32 %v2470_v16, 0.0  ;;  %v2504_v55 = vmax.f32 %v5661_v62, 0.0 }
 0x2e4   : > { %v2256_v63 = vpop.f32.mrf.mxu1  ;;  %v2503_v47 = vmax.f32 %v2425_v23, 0.0  ;;  %v2857_v23 = vld [vmem:[%s5793_s7] sm:$0xff] }
 0x2e5   : > { %v2480_v5 = vadd.f32 %v3407_v15, %v2255_v26  ;;  %v2513_v63 = vmax.f32 %v2475_v35, 0.0  ;;  %v2150_v15 = vadd.f32 %v5509_v28, %v5521_v7  ;;  %v2496_v7 = vmax.f32 %v2390_v0, 0.0 }
 0x2e6   : > { %v5620_v26 = vadd.f32 %v5573_v40, %v2225_v10  ;;  %v5634_v40 = vadd.f32 %v5539_v31, %v2140_v61  ;;  %v2125_v31 = vadd.f32 %v5509_v28, %v5502_v3  ;;  %v2195_v3 = vadd.f32 %v5509_v28, %v5537_v49 }
 0x2e7   : > { %v2514_v18 = vmax.f32 %v2480_v5, 0.0  ;;  %v2460_v5 = vadd.f32 %v3401_v42, %v2235_v41  ;;  %v2190_v49 = vadd.f32 %v5509_v28, %v5533_v59  ;;  %v5927_v41 = vld [vmem:[#allocation6_spill] sm:$0xff] }
 0x2e8   : > { %v2508_v37 = vmax.f32 %v5620_v26, 0.0  ;;  %v2491_v21 = vmax.f32 %v5634_v40, 0.0  ;;  %v2420_v59 = vadd.f32 %v5926_v58, %v2195_v3  ;;  %v2105_v30 = vadd.f32 %v5509_v28, %v5927_v41 }
 0x2e9   : > { %3220 = vmatprep.subr.msk.mxu1 %vm1731_vm5, %v2514_v18  ;;  %3254 = vmatprep.subr.mxu0 %v2514_v18  ;;  %v5601_v18 = vadd.f32 %v5541_v13, %v2155_v54  ;;  %v5614_v13 = vadd.f32 %v5545_v38, %v2150_v15  ;;  %v2510_v51 = vmax.f32 %v2460_v5, 0.0  ;;  %v5928_v54 = vld [vmem:[#allocation20_spill] sm:$0xff]  ;;  %v5932_v5 = vld [vmem:[#allocation10_spill] sm:$0xff] }
 0x2ea   : > { %3221 = vmatpush3.xpose.msk.msra.mxu1 %vm1731_vm5, %v2498_v12  ;;  %3255 = vmatpush3.msra.mxu0 %v2498_v12  ;;  %v2220_v12 = vadd.f32 %v5509_v28, %v5561_v57  ;;  %v2215_v57 = vadd.f32 %v5509_v28, %v5555_v36  ;;  %v2509_v36 = vmax.f32 %v5607_v14, 0.0  ;;  %v5934_v14 = vld [vmem:[#allocation14_spill] sm:$0xff] }
 0x2eb   : > { %3222 = vmatprep.subr.msk.mxu1 %vm1731_vm5, %v2513_v63  ;;  %3256 = vmatprep.subr.mxu0 %v2513_v63  ;;  %v2494_v38 = vmax.f32 %v5601_v18, 0.0  ;;  %v2493_v42 = vmax.f32 %v5614_v13, 0.0  ;;  %v5930_v63 = vld [vmem:[#allocation12_spill] sm:$0xff]  ;;  %v5935_v13 = vld [vmem:[#allocation13_spill] sm:$0xff] }
 0x2ec   : > { %3257 = vmatpush3.msra.mxu0 %v2497_v11  ;;  %v5603_v29 = vpop.f32.mrf.mxu0  ;;  %v5630_v32 = vadd.f32 %v5575_v48, %v2220_v12  ;;  %v5641_v53 = vadd.f32 %v5569_v8, %v2215_v57  ;;  %v2492_v48 = vmax.f32 %v5624_v1, 0.0  ;;  %v2120_v8 = vadd.f32 %v5509_v28, %v5496_v60  ;;  %v5933_v18 = vld [vmem:[#allocation24_spill] sm:$0xff] }
 0x2ed   : > { %3258 = vmatprep.subr.mxu0 %v2512_v2  ;;  %3252 = vmatprep.mubr.msk.f32.mxu1 %vm1731_vm5, %v5603_v29  ;;  %v5668_v60 = vadd.f32 %v5500_v56, %v2125_v31  ;;  %v5925_v56 = vld [vmem:[#allocation37_spill] sm:$0xff]  ;;  %v2415_v15 = vadd.f32 %v5930_v63, %v2190_v49  ;;  %v2502_v12 = vmax.f32 %v2420_v59, 0.0  ;;  %v2858_v49 = vld [vmem:[%s5793_s7 + $0x8] sm:$0xff] }
 0x2ee   : > { %3223 = vmatpush3.xpose.msk.msra.mxu1 %vm1731_vm5, %v2497_v11  ;;  %3259 = vmatpush3.msra.mxu0 %v2496_v7  ;;  %v3414_v16 = vpop.f32.mrf.mxu0  ;;  %v2507_v34 = vmax.f32 %v5630_v32, 0.0  ;;  %v2506_v20 = vmax.f32 %v5641_v53, 0.0  ;;  %v2345_v35 = vadd.f32 %v5504_v52, %v2120_v8  ;;  %v2185_v6 = vadd.f32 %v5509_v28, %v5925_v56  ;;  %v5931_v11 = vld [vmem:[#allocation11_spill] sm:$0xff] }
 0x2ef   : > { %3224 = vmatprep.subr.msk.mxu1 %vm1731_vm5, %v2512_v2  ;;  %3260 = vmatprep.subr.mxu0 %v2511_v39  ;;  %v2340_v52 = vadd.f32 %v5928_v54, %v2115_v24  ;;  %v2488_v0 = vmax.f32 %v5668_v60, 0.0  ;;  %v2100_v10 = vadd.f32 %v5509_v28, %v5931_v11  ;;  %v2335_v2 = vadd.f32 %v5932_v5, %v2110_v46  ;;  %v5936_v28 = vld [vmem:[#allocation5_spill] sm:$0xff]  ;;  %v2860_v60 = vld [vmem:[%s5793_s7 + $0x18] sm:$0xff] }
 0x2f0   : > { %3261 = vmatpush3.msra.mxu0 %v2495_v27  ;;  %v2487_v4 = vmax.f32 %v2345_v35, 0.0  ;;  %v2501_v16 = vmax.f32 %v2415_v15, 0.0  ;;  %v5937_v32 = vmov 0.0  }
 0x2f1   : > { %3262 = vmatprep.subr.mxu0 %v2510_v51  ;;  %v2486_v61 = vmax.f32 %v2340_v52, 0.0  ;;  %v2325_v57 = vadd.f32 %v5936_v28, %v2100_v10  ;;  %v2485_v26 = vmax.f32 %v2335_v2, 0.0 }
 0x2f2   : > { %3225 = vmatpush3.xpose.msk.msra.mxu1 %vm1731_vm5, %v2496_v7  ;;  %3263 = vmatpush3.msra.mxu0 %v2494_v38  ;;  %v2410_v7 = vadd.f32 %v5933_v18, %v2185_v6 }
 0x2f3   : > { %3226 = vmatprep.subr.msk.mxu1 %vm1731_vm5, %v2511_v39  ;;  %3264 = vmatprep.subr.mxu0 %v2509_v36  ;;  %v2330_v39 = vadd.f32 %v5934_v14, %v2105_v30  ;;  %v2483_v33 = vmax.f32 %v2325_v57, 0.0 }
 0x2f4   : > { %3265 = vmatpush3.msra.mxu0 %v2493_v42 }
 0x2f5   : > { %3266 = vmatprep.subr.mxu0 %v2508_v37  ;;  %v2484_v1 = vmax.f32 %v2330_v39, 0.0 }
 0x2f6   : > { %3227 = vmatpush3.xpose.msk.msra.mxu1 %vm1731_vm5, %v2495_v27  ;;  %3267 = vmatpush3.msra.mxu0 %v2492_v48  ;;  %v2405_v27 = vadd.f32 %v5935_v13, %v2180_v50 }
 0x2f7   : > { %3228 = vmatprep.subr.msk.mxu1 %vm1731_vm5, %v2510_v51  ;;  %3268 = vmatprep.subr.mxu0 %v2507_v34  ;;  %v2500_v51 = vmax.f32 %v2410_v7, 0.0 }
 0x2f8   : > { %3269 = vmatpush3.msra.mxu0 %v2491_v21 }
 0x2f9   : > { %3270 = vmatprep.subr.mxu0 %v2506_v20 }
 0x2fa   : > { %3229 = vmatpush3.xpose.msk.msra.mxu1 %vm1731_vm5, %v2494_v38  ;;  %3271 = vmatpush3.msra.mxu0 %v2490_v25  ;;  %v2499_v38 = vmax.f32 %v2405_v27, 0.0 }
 0x2fb   : > { %3230 = vmatprep.subr.msk.mxu1 %vm1731_vm5, %v2509_v36  ;;  %3272 = vmatprep.subr.mxu0 %v2505_v19 }
 0x2fc   : > { %3273 = vmatpush3.msra.mxu0 %v2489_v44 }
 0x2fd   : > { %3274 = vmatprep.subr.mxu0 %v2504_v55 }
 0x2fe   : > { %3231 = vmatpush3.xpose.msk.msra.mxu1 %vm1731_vm5, %v2493_v42  ;;  %3275 = vmatpush3.msra.mxu0 %v2488_v0 }
 0x2ff   : > { %3232 = vmatprep.subr.msk.mxu1 %vm1731_vm5, %v2508_v37  ;;  %3276 = vmatprep.subr.mxu0 %v2503_v47 }
 0x300   : > { %3277 = vmatpush3.msra.mxu0 %v2487_v4 }
 0x301   : > { %3278 = vmatprep.subr.mxu0 %v2502_v12 }
 0x302   : > { %3233 = vmatpush3.xpose.msk.msra.mxu1 %vm1731_vm5, %v2492_v48  ;;  %3279 = vmatpush3.msra.mxu0 %v2486_v61 }
 0x303   : > { %3234 = vmatprep.subr.msk.mxu1 %vm1731_vm5, %v2507_v34  ;;  %3280 = vmatprep.subr.mxu0 %v2501_v16 }
 0x304   : > { %3281 = vmatpush3.msra.mxu0 %v2485_v26 }
 0x305   : > { %3282 = vmatprep.subr.mxu0 %v2500_v51 }
 0x306   : > { %3235 = vmatpush3.xpose.msk.msra.mxu1 %vm1731_vm5, %v2491_v21  ;;  %3283 = vmatpush3.msra.mxu0 %v2484_v1 }
 0x307   : > { %3236 = vmatprep.subr.msk.mxu1 %vm1731_vm5, %v2506_v20  ;;  %3284 = vmatprep.subr.mxu0 %v2499_v38 }
 0x308   : > { %3285 = vmatpush3.msra.mxu0 %v2483_v33 }
 0x309   : > { %3415 = vmatprep.subr.mxu0 %v5937_v32 }
 0x30a   : > { %3237 = vmatpush3.xpose.msk.msra.mxu1 %vm1731_vm5, %v2490_v25  ;;  %v2859_v25 = vld [vmem:[%s5793_s7 + $0x10] sm:$0xff] }
 0x30b   : > { %3238 = vmatprep.subr.msk.mxu1 %vm1731_vm5, %v2505_v19 }
 0x30e   : > { %3239 = vmatpush3.xpose.msk.msra.mxu1 %vm1731_vm5, %v2489_v44  ;;  %v3137_v44 = vld [vmem:[%s5794_s8] ss:$0 sm:$0xff] }
 0x30f   : > { %3240 = vmatprep.subr.msk.mxu1 %vm1731_vm5, %v2504_v55 }
 0x312   : > { %3241 = vmatpush3.xpose.msk.msra.mxu1 %vm1731_vm5, %v2488_v0 }
 0x313   : > { %3242 = vmatprep.subr.msk.mxu1 %vm1731_vm5, %v2503_v47 }
 0x316   : > { %3243 = vmatpush3.xpose.msk.msra.mxu1 %vm1731_vm5, %v2487_v4 }
 0x317   : > { %3244 = vmatprep.subr.msk.mxu1 %vm1731_vm5, %v2502_v12 }
 0x31a   : > { %3245 = vmatpush3.xpose.msk.msra.mxu1 %vm1731_vm5, %v2486_v61 }
 0x31b   : > { %3246 = vmatprep.subr.msk.mxu1 %vm1731_vm5, %v2501_v16 }
 0x31e   : > { %3247 = vmatpush3.xpose.msk.msra.mxu1 %vm1731_vm5, %v2485_v26 }
 0x31f   : > { %3248 = vmatprep.subr.msk.mxu1 %vm1731_vm5, %v2500_v51 }
 0x322   : > { %3249 = vmatpush3.xpose.msk.msra.mxu1 %vm1731_vm5, %v2484_v1 }
 0x323   : > { %3250 = vmatprep.subr.msk.mxu1 %vm1731_vm5, %v2499_v38 }
 0x326   : > { %3251 = vmatpush3.xpose.msk.msra.mxu1 %vm1731_vm5, %v2483_v33 }
 0x329   : > { %3253 = vmatmul.mubr.msk.f32.vlgmr.msra.gmra.mxu1 %vm1731_vm5, %v5603_v29 }
 0x3e9   : > { %v2765_v36 = vpop.f32.mrf.mxu1 }
 0x3ea   : > { %v2770_v42 = vmul.f32 0.17677669, %v2765_v36 }
 0x3eb   : > { %v2767_v40 = vpop.f32.mrf.mxu1 }
 0x3ec   : > { %v2771_v17 = vmul.f32 0.17677669, %v2767_v40 }
 0x3ee   : > { %v2772_v53 = vmax.f32 %v2770_v42, %v2771_v17 }
 0x3f0   : > { %2773 = vmax.xlane.f32.xlu1 %v2772_v53 }
 0x479   : > { %v2774_v37 = vpop.xlane.xlu1 %2773 }
 0x47a   : > { %v2775_v31 = vsub.f32 %v2770_v42, %v2774_v37  ;;  %v2776_v48 = vsub.f32 %v2771_v17, %v2774_v37 }
 0x47c   : > { %v2777_v45 = vmul.f32 1.442695, %v2775_v31  ;;  %v2779_v43 = vmul.f32 1.442695, %v2776_v48 }
 0x47e   : > { %3952 = vpow2.f32 %v2777_v45 }
 0x47f   : > { %3954 = vpow2.f32 %v2779_v43 }
 0x48b   : > { %v3953_v34 = vpop.eup %3952 }
 0x48c   : > { %v3955_v8 = vpop.eup %3954 }
 0x48d   : > { %v2781_v21 = vadd.f32 %v3955_v8, %v3953_v34 }
 0x48f   : > { %2782 = vadd.xlane.f32.xlu0 %v2781_v21 }
 0x518   : > { %v2783_v3 = vpop.xlane.xlu0 %2782 }
 0x519   : > { %3956 = vrcp.f32 %v2783_v3 }
 0x526   : > { %v3957_v62 = vpop.eup %3956 }
 0x527   : > { %v2786_v20 = vmul.f32 %v3957_v62, %v3955_v8  ;;  %v2785_v24 = vmul.f32 %v3957_v62, %v3953_v34 }
 0x529   : > { %2851 = vmatprep.mubr.f32.mxu0 %v2786_v20 }
 0x52a   : > { %2852 = vmatmul.mubr.f32.vlgmr.msra.gmra.mxu0 %v2785_v24 }
 0x52b   : > { %3423 = vmatprep.mubr.msk.f32.mxu0 %vm4025_vm8, %v5937_v32  ;;  %3416 = vmatpush3.msra.mxu0 %v2860_v60 }
 0x52c   : > { %3417 = vmatprep.subr.mxu0 %v5937_v32 }
 0x52d   : > { %3418 = vmatpush3.msra.mxu0 %v2859_v25 }
 0x52e   : > { %3419 = vmatprep.subr.mxu0 %v5937_v32 }
 0x52f   : > { %3420 = vmatpush3.msra.mxu0 %v2858_v49 }
 0x530   : > { %3421 = vmatprep.subr.mxu0 %v5937_v32 }
 0x531   : > { %3422 = vmatpush3.msra.mxu0 %v2857_v23 }
 0x5ea   : > { %v3286_v19 = vpop.f32.mrf.mxu0 }
 0x5ec   : > { %v3287_v46 = vpop.f32.mrf.mxu0 }
 0x5ed   : > { %v3288_v35 = vadd.f32 %v3287_v46, %v3286_v19 }
 0x5ef   : > { %v2854_v22 = vadd.f32 %v3288_v35, %v5603_v29 }
 0x5f1   : > { %3424 = vmatmul.mubr.msk.f32.vlgmr.msra.gmra.mxu0 %vm1731_vm5, %v2854_v22 }
 0x6b1   : > { %v2937_v56 = vpop.f32.mrf.mxu0 }
 0x6b2   : > { %v2938_v6 = vadd.f32 %v3137_v44, %v2937_v56 }
 0x6b3   : > { %v3425_v29 = vpop.f32.mrf.mxu0 }
 0x6b4   : > { %2941 = vst.msk [vmem:[%s338_s23] sm:$0xff] %vm2526_vm9, %v2938_v6 }
 0x6b5   : > { %3971 = shalt.err (!%p3968_p3)
}
 0x6b6   : > { %s3972_s21 = scalar_lea.hbm %s5750_s26, 128  ;;  %s3976_s23 = scalar_lea.hbm %s5795_s9, 256 }
 0x6b7   : > { %p3973_p4 = scmp.ne.s32.totalorder %s5750_s26, %s3972_s21  ;;  %p3977_p9 = scmp.lt.s32.totalorder %s5750_s26, %s5795_s9 }
 0x6b8   : > { %p3978_p10 = scmp.lt.s32.totalorder %s3976_s23, %s3972_s21 }
 0x6b9   : > { %p3974_p7 = pnand %p3973_p4, %p4115_p5 }
 0x6ba   : > { %p3979_p11 = por %p3978_p10, %p3977_p9 }
 0x6bb   : > { %p3975_p8 = pneg %p3974_p7 }
 0x6bd   : > { %p3980_p12 = pnand %p3979_p11, %p3975_p8 }
 0x6bf   : > { %3983 = shalt.err (!%p3980_p12)
}
 0x6c0   : > { %3426 = dma.vmem_to_hbm [thread:$0]  (%p4115_p5), %s2957_s24, 128, %s5750_s26, %s2943_s28  }
 0x6c1 PF: > { %p3432_p13 = scmp.ge.s32.totalorder %s4018_s12, 2  ;;  %s2968_s29 = sand.u32 1, %s4006_s30  }
 0x6c2   : > { %s2969_s13 = scalar_lea.sflag [#allocation3], %s2968_s29 }
 0x6c3   : > { %p3429_p0 = pnand %p3432_p13, %p4119_p6 }
 0x6c5   : > { %p3430_p1 = pneg %p3429_p0 }
 0x6c7   : > { %4001 = dma.done.wait (%p3430_p1), %s2969_s13, 128  }
 0x6c8   : > { %4003 = vsyncadd (%p3430_p1), %s2969_s13, 4294967168  ;;  %p19_p2 = scmp.ge.s32.totalorder %s4102_s15, 4   ;;  %s5938_s30 = smov %s4010_s10 }
 0x6c9   : > { %s5939_s10 = smov %s4014_s11  ;;  %s5940_s11 = smov %s4113_s18 }
 0x6ca   : > { %s5941_s12 = smov %s4102_s15  ;;  %21 = sbr.rel (!%p19_p2) target bundleno = 3 (0x3), region = 94 }
 0x6cf   :  { %2974 = vsyncpa [#allocation3], 1 }
 0x6d0   :  { %2976 = vsyncpa [#allocation3 + $0x1], 1 }

</bundles_post_ra>
